<compile_context>
chip_gen: v7x
topology: tpu7x:2x2x1
jax: 0.10.0
libtpu: 0.0.40
codegen_flags: <defaults>
</compile_context>

<pallas_src>
import functools

import jax
import jax.numpy as jnp
from jax.experimental import pallas as pl
from jax.experimental.pallas import tpu as pltpu

D_MODEL = 32
D_INNER = 64
KSIZE = 3
PACK = 4                    # timesteps packed per 128-lane row (4 * 32 = 128)
EPS = 1e-5                  # nn.LayerNorm default


def conv_ff_kernel(x_ref, w1m_ref, w1p_ref, w1n_ref, b1_ref,
                   w2m_ref, w2p_ref, w2n_ref, b2_ref,
                   mavg_ref, gamma_ref, beta_ref, out_ref, *, rows_per_seq):
    rows = x_ref.shape[0]
    x = x_ref[...].astype(jnp.float32)             # (rows, PACK*d_model) = (rows, 128)

    # Row position inside its sequence (blocks hold whole sequences and
    # T % 4 == 0, so sequence edges coincide with packed-row edges).
    r = jax.lax.broadcasted_iota(jnp.int32, (rows, 1), 0) % rows_per_seq
    not_first = r != 0
    not_last = r != rows_per_seq - 1

    def prev_row(v):
        # v[r-1] within each sequence, zeros at the first row ('same' zero pad).
        return jnp.where(not_first, pltpu.roll(v, 1, 0), 0.0)

    def next_row(v):
        return jnp.where(not_last, pltpu.roll(v, v.shape[0] - 1, 0), 0.0)

    # ---- Conv1d(d_model -> d_inner, k=3, padding=1) + bias + ReLU ----
    # In-row taps via the banded weight; cross-row taps via masked rolled rows.
    h = jnp.dot(x, w1m_ref[...], preferred_element_type=jnp.float32)
    h = h + jnp.dot(prev_row(x), w1p_ref[...], preferred_element_type=jnp.float32)
    h = h + jnp.dot(next_row(x), w1n_ref[...], preferred_element_type=jnp.float32)
    h = jnp.maximum(h + b1_ref[...], 0.0)          # (rows, PACK*d_inner) = (rows, 256)

    # ---- Conv1d(d_inner -> d_model, k=3, padding=1) + bias ----
    y = jnp.dot(h, w2m_ref[...], preferred_element_type=jnp.float32)
    y = y + jnp.dot(prev_row(h), w2p_ref[...], preferred_element_type=jnp.float32)
    y = y + jnp.dot(next_row(h), w2n_ref[...], preferred_element_type=jnp.float32)
    y = y + b2_ref[...]                            # (rows, 128)
    # TODO(synk): nn.Dropout omitted (identity at inference / eval time).

    # ---- residual add + LayerNorm per 32-lane timestep group (post-lnorm) ----
    z = x + y
    mean = jnp.dot(z, mavg_ref[...], preferred_element_type=jnp.float32)
    mean_sq = jnp.dot(z * z, mavg_ref[...], preferred_element_type=jnp.float32)
    var = mean_sq - mean * mean                    # one-pass variance
    zn = (z - mean) * jax.lax.rsqrt(var + EPS)
    out_ref[...] = (zn * gamma_ref[...] + beta_ref[...]).astype(out_ref.dtype)


def _pack_conv_weights(w, cin, cout):
    """w: (K=3, cin, cout) -> (main, prev, next) banded matrices for packed rows.

    main: (PACK*cin, PACK*cout) holds all in-row taps; prev/next hold the
    cross-row correction applied to the previous / next packed row (those rows
    are masked to zero at sequence edges, reproducing 'same' zero padding).
    """
    wm = jnp.zeros((PACK * cin, PACK * cout), w.dtype)
    wp = jnp.zeros_like(wm)
    wn = jnp.zeros_like(wm)
    for g in range(PACK):
        wm = wm.at[g * cin:(g + 1) * cin, g * cout:(g + 1) * cout].set(w[1])
        if g >= 1:
            wm = wm.at[(g - 1) * cin:g * cin, g * cout:(g + 1) * cout].set(w[0])
        else:
            wp = wp.at[(PACK - 1) * cin:PACK * cin, 0:cout].set(w[0])
        if g <= PACK - 2:
            wm = wm.at[(g + 1) * cin:(g + 2) * cin, g * cout:(g + 1) * cout].set(w[2])
        else:
            wn = wn.at[0:cin, (PACK - 1) * cout:PACK * cout].set(w[2])
    return wm, wp, wn


def _chip_defaults():
    """Generation-aware block-size target, VMEM limit and minimum grid blocks."""
    vmem_bytes = 64 << 20                                  # conservative fallback
    try:
        vmem_bytes = int(pltpu.get_tpu_info().vmem_capacity_bytes)
    except Exception:
        pass
    if vmem_bytes <= (64 << 20):
        # v7x-class: 64 MiB VMEM per TensorCore, 2 TensorCores per chip.
        return {"target_steps": 4096, "vmem_limit": 48 << 20, "min_blocks": 4}
    # v5e/v6e: 128 MiB VMEM, single TensorCore -> biggest blocks, no forced split.
    return {"target_steps": 8192, "vmem_limit": 100 << 20, "min_blocks": 1}


def _seqs_per_block(batch, seq_len, target_steps, min_blocks):
    """Whole sequences per grid block.

    Keeps the packed-row block count sublane-aligned (multiple of 8) unless the
    block spans the full array, targets `target_steps` timesteps per block, and
    on multi-TensorCore chips prefers >= min_blocks grid steps as long as the
    block does not become tiny.
    """
    rows_per_seq = seq_len // PACK
    cands = [n for n in range(1, batch + 1)
             if batch % n == 0 and ((n * rows_per_seq) % 8 == 0 or n == batch)]
    best = cands[0]
    for n in cands:                                 # largest candidate within target
        if n * seq_len <= target_steps:
            best = n
    if min_blocks > 1 and batch // best < min_blocks:
        for n in reversed(cands):                   # largest valid smaller split
            if n < best and batch // n >= min_blocks and n * seq_len >= 1024:
                best = n
                break
    return best


def positionwise_conv_ff(x, w1, b1, w2, b2, gamma, beta, *,
                         target_steps=None, vmem_limit_bytes=None, min_blocks=None):
    """x: (B, T, d_model) f32, T % 4 == 0.

    w1/w2: (K, C_in, C_out) — PyTorch Conv1d weights (C_out, C_in, K) must be
    transposed with (2, 1, 0) before calling.  b*/gamma/beta: (1, C).
    """
    B, T, C = x.shape
    assert C == D_MODEL
    # TODO(synk): ragged / non-multiple-of-4 sequence lengths would need a
    # padded tail row; not required for this module's usage.
    assert T % PACK == 0, "T must be a multiple of 4"

    cfg = _chip_defaults()
    target_steps = cfg["target_steps"] if target_steps is None else target_steps
    vmem_limit_bytes = cfg["vmem_limit"] if vmem_limit_bytes is None else vmem_limit_bytes
    min_blocks = cfg["min_blocks"] if min_blocks is None else min_blocks

    rows_total = (B * T) // PACK
    bpb = _seqs_per_block(B, T, target_steps, min_blocks)
    block_rows = (bpb * T) // PACK
    grid = (B // bpb,)

    W = PACK * D_MODEL                              # 128 lanes (x / y / out)
    WH = PACK * D_INNER                             # 256 lanes (hidden)

    x128 = x.reshape(rows_total, W)                 # free row-major reshape

    # Packed weights / params (in production these are precomputed once).
    w1m, w1p, w1n = _pack_conv_weights(w1, D_MODEL, D_INNER)
    w2m, w2p, w2n = _pack_conv_weights(w2, D_INNER, D_MODEL)
    b1t = jnp.tile(b1.reshape(1, D_INNER), (1, PACK)).astype(jnp.float32)
    b2t = jnp.tile(b2.reshape(1, D_MODEL), (1, PACK)).astype(jnp.float32)
    gammat = jnp.tile(gamma.reshape(1, D_MODEL), (1, PACK)).astype(jnp.float32)
    betat = jnp.tile(beta.reshape(1, D_MODEL), (1, PACK)).astype(jnp.float32)
    lane = jnp.arange(W)
    mavg = jnp.where((lane[:, None] // D_MODEL) == (lane[None, :] // D_MODEL),
                     1.0 / D_MODEL, 0.0).astype(jnp.float32)

    const = lambda i: (0, 0)                        # params stay VMEM-resident
    out = pl.pallas_call(
        functools.partial(conv_ff_kernel, rows_per_seq=T // PACK),
        out_shape=jax.ShapeDtypeStruct((rows_total, W), x.dtype),
        grid_spec=pltpu.PrefetchScalarGridSpec(
            num_scalar_prefetch=0,
            grid=grid,
            in_specs=[
                pl.BlockSpec((block_rows, W), lambda i: (i, 0)),
                pl.BlockSpec((W, WH), const),       # w1 main band
                pl.BlockSpec((W, WH), const),       # w1 prev-row correction
                pl.BlockSpec((W, WH), const),       # w1 next-row correction
                pl.BlockSpec((1, WH), const),       # b1 (tiled over groups)
                pl.BlockSpec((WH, W), const),       # w2 main band
                pl.BlockSpec((WH, W), const),       # w2 prev-row correction
                pl.BlockSpec((WH, W), const),       # w2 next-row correction
                pl.BlockSpec((1, W), const),        # b2 (tiled)
                pl.BlockSpec((W, W), const),        # block-diag group-mean matrix
                pl.BlockSpec((1, W), const),        # gamma (tiled)
                pl.BlockSpec((1, W), const),        # beta (tiled)
            ],
            out_specs=pl.BlockSpec((block_rows, W), lambda i: (i, 0)),
        ),
        compiler_params=pltpu.CompilerParams(
            dimension_semantics=("parallel",),
            vmem_limit_bytes=vmem_limit_bytes),
    )(x128, w1m, w1p, w1n, b1t, w2m, w2p, w2n, b2t, mavg, gammat, betat)
    return out.reshape(B, T, D_MODEL)


def reference(x, w1, b1, w2, b2, gamma, beta):
    """Pure-JAX reference of the same forward pass (3-tap formulation)."""
    B, T, _ = x.shape
    pad = KSIZE // 2
    x_pad = jnp.pad(x, ((0, 0), (pad, pad), (0, 0)))
    h = jnp.broadcast_to(b1, (B, T, D_INNER))
    for k in range(KSIZE):
        h = h + jnp.einsum("btc,cd->btd", x_pad[:, k:k + T, :], w1[k])
    h = jnp.maximum(h, 0.0)
    h_pad = jnp.pad(h, ((0, 0), (pad, pad), (0, 0)))
    y = jnp.broadcast_to(b2, (B, T, D_MODEL))
    for k in range(KSIZE):
        y = y + jnp.einsum("btc,cd->btd", h_pad[:, k:k + T, :], w2[k])
    z = x + y
    mean = jnp.mean(z, axis=-1, keepdims=True)
    var = jnp.mean((z - mean) ** 2, axis=-1, keepdims=True)
    return (z - mean) * jax.lax.rsqrt(var + EPS) * gamma + beta


if __name__ == "__main__":
    B, T = 4, 32
    key = jax.random.PRNGKey(0)
    kx, k1, kb1, k2, kb2, kg, kb = jax.random.split(key, 7)

    x = jax.random.normal(kx, (B, T, D_MODEL), dtype=jnp.float32)
    # Conv weights in (K, C_in, C_out) layout (PyTorch (C_out, C_in, K) transposed).
    w1 = jax.random.normal(k1, (KSIZE, D_MODEL, D_INNER), jnp.float32) * 0.05
    b1 = jax.random.normal(kb1, (1, D_INNER), jnp.float32) * 0.05
    w2 = jax.random.normal(k2, (KSIZE, D_INNER, D_MODEL), jnp.float32) * 0.05
    b2 = jax.random.normal(kb2, (1, D_MODEL), jnp.float32) * 0.05
    gamma = 1.0 + 0.1 * jax.random.normal(kg, (1, D_MODEL), jnp.float32)
    beta = 0.1 * jax.random.normal(kb, (1, D_MODEL), jnp.float32)

    ref = reference(x, w1, b1, w2, b2, gamma[0], beta[0])

    # Default (generation-aware) tiling.
    out = jax.block_until_ready(positionwise_conv_ff(x, w1, b1, w2, b2, gamma, beta))
    assert out.shape == (B, T, D_MODEL)
    err = float(jnp.max(jnp.abs(out - ref)))
    assert jnp.allclose(out, ref, atol=5e-4, rtol=5e-4), f"max abs err {err}"

    # Forced multi-block path (grid > 1) to exercise per-block halo masking.
    out2 = jax.block_until_ready(
        positionwise_conv_ff(x, w1, b1, w2, b2, gamma, beta, target_steps=T))
    err2 = float(jnp.max(jnp.abs(out2 - ref)))
    assert jnp.allclose(out2, ref, atol=5e-4, rtol=5e-4), f"max abs err {err2}"

    print("KERNEL_OK")
</pallas_src>

<mosaic_0001>
module attributes {stable_mosaic.version = 11 : i64} {
  func.func @conv_ff_kernel(%arg0: i32, %arg1: memref<32x128xf32, #tpu.memory_space<vmem>>, %arg2: memref<128x256xf32, #tpu.memory_space<vmem>>, %arg3: memref<128x256xf32, #tpu.memory_space<vmem>>, %arg4: memref<128x256xf32, #tpu.memory_space<vmem>>, %arg5: memref<1x256xf32, #tpu.memory_space<vmem>>, %arg6: memref<256x128xf32, #tpu.memory_space<vmem>>, %arg7: memref<256x128xf32, #tpu.memory_space<vmem>>, %arg8: memref<256x128xf32, #tpu.memory_space<vmem>>, %arg9: memref<1x128xf32, #tpu.memory_space<vmem>>, %arg10: memref<128x128xf32, #tpu.memory_space<vmem>>, %arg11: memref<1x128xf32, #tpu.memory_space<vmem>>, %arg12: memref<1x128xf32, #tpu.memory_space<vmem>>, %arg13: memref<32x128xf32, #tpu.memory_space<vmem>>) attributes {dimension_semantics = [#tpu.dimension_semantics<parallel>], iteration_bounds = array<i64: 1>, scalar_prefetch = 0 : i64, scratch_operands = 0 : i64, tpu.core_type = #tpu.core_type<tc>, window_params = [{transform_indices = @transform_0, window_bounds = array<i64: 32, 128>}, {pipeline_mode = #tpu.pipeline_mode<synchronous>, transform_indices = @transform_1, window_bounds = array<i64: 128, 256>}, {pipeline_mode = #tpu.pipeline_mode<synchronous>, transform_indices = @transform_2, window_bounds = array<i64: 128, 256>}, {pipeline_mode = #tpu.pipeline_mode<synchronous>, transform_indices = @transform_3, window_bounds = array<i64: 128, 256>}, {pipeline_mode = #tpu.pipeline_mode<synchronous>, transform_indices = @transform_4, window_bounds = array<i64: 1, 256>}, {pipeline_mode = #tpu.pipeline_mode<synchronous>, transform_indices = @transform_5, window_bounds = array<i64: 256, 128>}, {pipeline_mode = #tpu.pipeline_mode<synchronous>, transform_indices = @transform_6, window_bounds = array<i64: 256, 128>}, {pipeline_mode = #tpu.pipeline_mode<synchronous>, transform_indices = @transform_7, window_bounds = array<i64: 256, 128>}, {pipeline_mode = #tpu.pipeline_mode<synchronous>, transform_indices = @transform_8, window_bounds = array<i64: 1, 128>}, {pipeline_mode = #tpu.pipeline_mode<synchronous>, transform_indices = @transform_9, window_bounds = array<i64: 128, 128>}, {pipeline_mode = #tpu.pipeline_mode<synchronous>, transform_indices = @transform_10, window_bounds = array<i64: 1, 128>}, {pipeline_mode = #tpu.pipeline_mode<synchronous>, transform_indices = @transform_11, window_bounds = array<i64: 1, 128>}, {transform_indices = @transform_12, window_bounds = array<i64: 32, 128>}]} {
    %c0 = arith.constant 0 : index
    %c0_0 = arith.constant 0 : index
    %0 = vector.load %arg1[%c0, %c0_0] : memref<32x128xf32, #tpu.memory_space<vmem>>, vector<32x128xf32>
    %1 = tpu.iota {dimensions = array<i32: 0>} : vector<32x1xi32>
    %c8_i32 = arith.constant 8 : i32
    %c0_i32 = arith.constant 0 : i32
    %2 = arith.cmpi eq, %c8_i32, %c0_i32 : i32
    %c1_i32 = arith.constant 1 : i32
    %3 = arith.select %2, %c1_i32, %c8_i32 : i32
    %4 = vector.broadcast %3 : i32 to vector<32x1xi32>
    %5 = arith.remsi %1, %4 : vector<32x1xi32>
    %c0_i32_1 = arith.constant 0 : i32
    %6 = vector.broadcast %c0_i32_1 : i32 to vector<32x1xi32>
    %7 = arith.cmpi ne, %5, %6 : vector<32x1xi32>
    %c0_i32_2 = arith.constant 0 : i32
    %8 = vector.broadcast %c0_i32_2 : i32 to vector<32x1xi32>
    %9 = arith.cmpi slt, %5, %8 : vector<32x1xi32>
    %c0_i32_3 = arith.constant 0 : i32
    %10 = arith.cmpi slt, %3, %c0_i32_3 : i32
    %11 = vector.broadcast %10 : i1 to vector<32x1xi1>
    %12 = vector.broadcast %11 : vector<32x1xi1> to vector<32x1xi1>
    %13 = arith.xori %9, %12 : vector<32x1xi1>
    %14 = arith.andi %13, %7 : vector<32x1xi1>
    %15 = vector.broadcast %3 : i32 to vector<32x1xi32>
    %16 = arith.addi %5, %15 : vector<32x1xi32>
    %17 = arith.select %14, %16, %5 : vector<32x1xi1>, vector<32x1xi32>
    %c0_i32_4 = arith.constant 0 : i32
    %18 = vector.broadcast %c0_i32_4 : i32 to vector<32x1xi32>
    %19 = arith.cmpi ne, %17, %18 : vector<32x1xi32>
    %c7_i32 = arith.constant 7 : i32
    %20 = vector.broadcast %c7_i32 : i32 to vector<32x1xi32>
    %21 = arith.cmpi ne, %17, %20 : vector<32x1xi32>
    %c0_5 = arith.constant 0 : index
    %c0_6 = arith.constant 0 : index
    %22 = vector.load %arg2[%c0_5, %c0_6] : memref<128x256xf32, #tpu.memory_space<vmem>>, vector<128x256xf32>
    %cst = arith.constant dense<0.000000e+00> : vector<32x256xf32>
    %23 = tpu.matmul %0, %22, %cst {dimension_numbers = #tpu.dot_dimension_numbers<[1], [0], [0], [1], [0, 0, 1, 1], [], []>} : vector<32x128xf32>, vector<128x256xf32>, vector<32x256xf32> -> vector<32x256xf32>
    %c1_i32_7 = arith.constant 1 : i32
    %24 = tpu.dynamic_rotate %0 by %c1_i32_7 dim 0 : vector<32x128xf32>, i32 -> vector<32x128xf32>
    %cst_8 = arith.constant 0.000000e+00 : f32
    %25 = vector.shape_cast %19 : vector<32x1xi1> to vector<32x1xi1>
    %26 = vector.broadcast %25 : vector<32x1xi1> to vector<32x128xi1>
    %27 = vector.broadcast %cst_8 : f32 to vector<32x128xf32>
    %28 = arith.select %26, %24, %27 : vector<32x128xi1>, vector<32x128xf32>
    %c0_9 = arith.constant 0 : index
    %c0_10 = arith.constant 0 : index
    %29 = vector.load %arg3[%c0_9, %c0_10] : memref<128x256xf32, #tpu.memory_space<vmem>>, vector<128x256xf32>
    %cst_11 = arith.constant dense<0.000000e+00> : vector<32x256xf32>
    %30 = tpu.matmul %28, %29, %cst_11 {dimension_numbers = #tpu.dot_dimension_numbers<[1], [0], [0], [1], [0, 0, 1, 1], [], []>} : vector<32x128xf32>, vector<128x256xf32>, vector<32x256xf32> -> vector<32x256xf32>
    %31 = arith.addf %23, %30 : vector<32x256xf32>
    %c31_i32 = arith.constant 31 : i32
    %32 = tpu.dynamic_rotate %0 by %c31_i32 dim 0 : vector<32x128xf32>, i32 -> vector<32x128xf32>
    %cst_12 = arith.constant 0.000000e+00 : f32
    %33 = vector.shape_cast %21 : vector<32x1xi1> to vector<32x1xi1>
    %34 = vector.broadcast %33 : vector<32x1xi1> to vector<32x128xi1>
    %35 = vector.broadcast %cst_12 : f32 to vector<32x128xf32>
    %36 = arith.select %34, %32, %35 : vector<32x128xi1>, vector<32x128xf32>
    %c0_13 = arith.constant 0 : index
    %c0_14 = arith.constant 0 : index
    %37 = vector.load %arg4[%c0_13, %c0_14] : memref<128x256xf32, #tpu.memory_space<vmem>>, vector<128x256xf32>
    %cst_15 = arith.constant dense<0.000000e+00> : vector<32x256xf32>
    %38 = tpu.matmul %36, %37, %cst_15 {dimension_numbers = #tpu.dot_dimension_numbers<[1], [0], [0], [1], [0, 0, 1, 1], [], []>} : vector<32x128xf32>, vector<128x256xf32>, vector<32x256xf32> -> vector<32x256xf32>
    %39 = arith.addf %31, %38 : vector<32x256xf32>
    %c0_16 = arith.constant 0 : index
    %c0_17 = arith.constant 0 : index
    %40 = vector.load %arg5[%c0_16, %c0_17] : memref<1x256xf32, #tpu.memory_space<vmem>>, vector<1x256xf32>
    %41 = vector.broadcast %40 : vector<1x256xf32> to vector<32x256xf32>
    %42 = arith.addf %39, %41 : vector<32x256xf32>
    %cst_18 = arith.constant 0.000000e+00 : f32
    %43 = vector.broadcast %cst_18 : f32 to vector<32x256xf32>
    %44 = arith.maximumf %42, %43 : vector<32x256xf32>
    %c0_19 = arith.constant 0 : index
    %c0_20 = arith.constant 0 : index
    %45 = vector.load %arg6[%c0_19, %c0_20] : memref<256x128xf32, #tpu.memory_space<vmem>>, vector<256x128xf32>
    %cst_21 = arith.constant dense<0.000000e+00> : vector<32x128xf32>
    %46 = tpu.matmul %44, %45, %cst_21 {dimension_numbers = #tpu.dot_dimension_numbers<[1], [0], [0], [1], [0, 0, 1, 1], [], []>} : vector<32x256xf32>, vector<256x128xf32>, vector<32x128xf32> -> vector<32x128xf32>
    %c1_i32_22 = arith.constant 1 : i32
    %47 = tpu.dynamic_rotate %44 by %c1_i32_22 dim 0 : vector<32x256xf32>, i32 -> vector<32x256xf32>
    %cst_23 = arith.constant 0.000000e+00 : f32
    %48 = vector.shape_cast %19 : vector<32x1xi1> to vector<32x1xi1>
    %49 = vector.broadcast %48 : vector<32x1xi1> to vector<32x256xi1>
    %50 = vector.broadcast %cst_23 : f32 to vector<32x256xf32>
    %51 = arith.select %49, %47, %50 : vector<32x256xi1>, vector<32x256xf32>
    %c0_24 = arith.constant 0 : index
    %c0_25 = arith.constant 0 : index
    %52 = vector.load %arg7[%c0_24, %c0_25] : memref<256x128xf32, #tpu.memory_space<vmem>>, vector<256x128xf32>
    %cst_26 = arith.constant dense<0.000000e+00> : vector<32x128xf32>
    %53 = tpu.matmul %51, %52, %cst_26 {dimension_numbers = #tpu.dot_dimension_numbers<[1], [0], [0], [1], [0, 0, 1, 1], [], []>} : vector<32x256xf32>, vector<256x128xf32>, vector<32x128xf32> -> vector<32x128xf32>
    %54 = arith.addf %46, %53 : vector<32x128xf32>
    %c31_i32_27 = arith.constant 31 : i32
    %55 = tpu.dynamic_rotate %44 by %c31_i32_27 dim 0 : vector<32x256xf32>, i32 -> vector<32x256xf32>
    %cst_28 = arith.constant 0.000000e+00 : f32
    %56 = vector.shape_cast %21 : vector<32x1xi1> to vector<32x1xi1>
    %57 = vector.broadcast %56 : vector<32x1xi1> to vector<32x256xi1>
    %58 = vector.broadcast %cst_28 : f32 to vector<32x256xf32>
    %59 = arith.select %57, %55, %58 : vector<32x256xi1>, vector<32x256xf32>
    %c0_29 = arith.constant 0 : index
    %c0_30 = arith.constant 0 : index
    %60 = vector.load %arg8[%c0_29, %c0_30] : memref<256x128xf32, #tpu.memory_space<vmem>>, vector<256x128xf32>
    %cst_31 = arith.constant dense<0.000000e+00> : vector<32x128xf32>
    %61 = tpu.matmul %59, %60, %cst_31 {dimension_numbers = #tpu.dot_dimension_numbers<[1], [0], [0], [1], [0, 0, 1, 1], [], []>} : vector<32x256xf32>, vector<256x128xf32>, vector<32x128xf32> -> vector<32x128xf32>
    %62 = arith.addf %54, %61 : vector<32x128xf32>
    %c0_32 = arith.constant 0 : index
    %c0_33 = arith.constant 0 : index
    %63 = vector.load %arg9[%c0_32, %c0_33] : memref<1x128xf32, #tpu.memory_space<vmem>>, vector<1x128xf32>
    %64 = vector.broadcast %63 : vector<1x128xf32> to vector<32x128xf32>
    %65 = arith.addf %62, %64 : vector<32x128xf32>
    %66 = arith.addf %0, %65 : vector<32x128xf32>
    %c0_34 = arith.constant 0 : index
    %c0_35 = arith.constant 0 : index
    %67 = vector.load %arg10[%c0_34, %c0_35] : memref<128x128xf32, #tpu.memory_space<vmem>>, vector<128x128xf32>
    %cst_36 = arith.constant dense<0.000000e+00> : vector<32x128xf32>
    %68 = tpu.matmul %66, %67, %cst_36 {dimension_numbers = #tpu.dot_dimension_numbers<[1], [0], [0], [1], [0, 0, 1, 1], [], []>} : vector<32x128xf32>, vector<128x128xf32>, vector<32x128xf32> -> vector<32x128xf32>
    %69 = arith.mulf %66, %66 : vector<32x128xf32>
    %c0_37 = arith.constant 0 : index
    %c0_38 = arith.constant 0 : index
    %70 = vector.load %arg10[%c0_37, %c0_38] : memref<128x128xf32, #tpu.memory_space<vmem>>, vector<128x128xf32>
    %cst_39 = arith.constant dense<0.000000e+00> : vector<32x128xf32>
    %71 = tpu.matmul %69, %70, %cst_39 {dimension_numbers = #tpu.dot_dimension_numbers<[1], [0], [0], [1], [0, 0, 1, 1], [], []>} : vector<32x128xf32>, vector<128x128xf32>, vector<32x128xf32> -> vector<32x128xf32>
    %72 = arith.mulf %68, %68 : vector<32x128xf32>
    %73 = arith.subf %71, %72 : vector<32x128xf32>
    %74 = arith.subf %66, %68 : vector<32x128xf32>
    %cst_40 = arith.constant 9.99999974E-6 : f32
    %75 = vector.broadcast %cst_40 : f32 to vector<32x128xf32>
    %76 = arith.addf %73, %75 : vector<32x128xf32>
    %77 = math.rsqrt %76 : vector<32x128xf32>
    %78 = arith.mulf %74, %77 : vector<32x128xf32>
    %c0_41 = arith.constant 0 : index
    %c0_42 = arith.constant 0 : index
    %79 = vector.load %arg11[%c0_41, %c0_42] : memref<1x128xf32, #tpu.memory_space<vmem>>, vector<1x128xf32>
    %80 = vector.broadcast %79 : vector<1x128xf32> to vector<32x128xf32>
    %81 = arith.mulf %78, %80 : vector<32x128xf32>
    %c0_43 = arith.constant 0 : index
    %c0_44 = arith.constant 0 : index
    %82 = vector.load %arg12[%c0_43, %c0_44] : memref<1x128xf32, #tpu.memory_space<vmem>>, vector<1x128xf32>
    %83 = vector.broadcast %82 : vector<1x128xf32> to vector<32x128xf32>
    %84 = arith.addf %81, %83 : vector<32x128xf32>
    %c0_45 = arith.constant 0 : index
    %c0_46 = arith.constant 0 : index
    %85 = vector.load %arg13[%c0_45, %c0_46] : memref<32x128xf32, #tpu.memory_space<vmem>>, vector<32x128xf32>
    tpu.vector_store %arg13[%c0_45, %c0_46], %84 {strides = array<i32>} : memref<32x128xf32, #tpu.memory_space<vmem>>, vector<32x128xf32>,
    return
  }
  func.func @transform_0(%arg0: i32) -> (i32, i32) {
    %c0_i32 = arith.constant 0 : i32
    %c0_i32_0 = arith.constant 0 : i32
    return %arg0, %c0_i32 : i32, i32
  }
  func.func @transform_1(%arg0: i32) -> (i32, i32) {
    %c0_i32 = arith.constant 0 : i32
    %c0_i32_0 = arith.constant 0 : i32
    %c0_i32_1 = arith.constant 0 : i32
    return %c0_i32, %c0_i32_0 : i32, i32
  }
  func.func @transform_2(%arg0: i32) -> (i32, i32) {
    %c0_i32 = arith.constant 0 : i32
    %c0_i32_0 = arith.constant 0 : i32
    %c0_i32_1 = arith.constant 0 : i32
    return %c0_i32, %c0_i32_0 : i32, i32
  }
  func.func @transform_3(%arg0: i32) -> (i32, i32) {
    %c0_i32 = arith.constant 0 : i32
    %c0_i32_0 = arith.constant 0 : i32
    %c0_i32_1 = arith.constant 0 : i32
    return %c0_i32, %c0_i32_0 : i32, i32
  }
  func.func @transform_4(%arg0: i32) -> (i32, i32) {
    %c0_i32 = arith.constant 0 : i32
    %c0_i32_0 = arith.constant 0 : i32
    %c0_i32_1 = arith.constant 0 : i32
    return %c0_i32, %c0_i32_0 : i32, i32
  }
  func.func @transform_5(%arg0: i32) -> (i32, i32) {
    %c0_i32 = arith.constant 0 : i32
    %c0_i32_0 = arith.constant 0 : i32
    %c0_i32_1 = arith.constant 0 : i32
    return %c0_i32, %c0_i32_0 : i32, i32
  }
  func.func @transform_6(%arg0: i32) -> (i32, i32) {
    %c0_i32 = arith.constant 0 : i32
    %c0_i32_0 = arith.constant 0 : i32
    %c0_i32_1 = arith.constant 0 : i32
    return %c0_i32, %c0_i32_0 : i32, i32
  }
  func.func @transform_7(%arg0: i32) -> (i32, i32) {
    %c0_i32 = arith.constant 0 : i32
    %c0_i32_0 = arith.constant 0 : i32
    %c0_i32_1 = arith.constant 0 : i32
    return %c0_i32, %c0_i32_0 : i32, i32
  }
  func.func @transform_8(%arg0: i32) -> (i32, i32) {
    %c0_i32 = arith.constant 0 : i32
    %c0_i32_0 = arith.constant 0 : i32
    %c0_i32_1 = arith.constant 0 : i32
    return %c0_i32, %c0_i32_0 : i32, i32
  }
  func.func @transform_9(%arg0: i32) -> (i32, i32) {
    %c0_i32 = arith.constant 0 : i32
    %c0_i32_0 = arith.constant 0 : i32
    %c0_i32_1 = arith.constant 0 : i32
    return %c0_i32, %c0_i32_0 : i32, i32
  }
  func.func @transform_10(%arg0: i32) -> (i32, i32) {
    %c0_i32 = arith.constant 0 : i32
    %c0_i32_0 = arith.constant 0 : i32
    %c0_i32_1 = arith.constant 0 : i32
    return %c0_i32, %c0_i32_0 : i32, i32
  }
  func.func @transform_11(%arg0: i32) -> (i32, i32) {
    %c0_i32 = arith.constant 0 : i32
    %c0_i32_0 = arith.constant 0 : i32
    %c0_i32_1 = arith.constant 0 : i32
    return %c0_i32, %c0_i32_0 : i32, i32
  }
  func.func @transform_12(%arg0: i32) -> (i32, i32) {
    %c0_i32 = arith.constant 0 : i32
    %c0_i32_0 = arith.constant 0 : i32
    return %arg0, %c0_i32 : i32, i32
  }
}

</mosaic_0001>

<bundles_post_ra>
// kernel: tpu_custom_call.1
= control target key start
LH: loop header
LB: loop body
LE: loop exit
PB: predicated region body
PF: predicated region fallthrough
CT: control target
= control target key end

     0   :  { %17 = vsyncpa [#allocation3], 0  ;;  %s2629_s0 = inlined_call_operand.hbm [shape: f32[32,128], index: 0, kind: input, shape index: {}]   ;;  %s2630_s1 = inlined_call_operand.hbm [shape: f32[128,256], index: 1, kind: input, shape index: {}]   ;;  %s2631_s2 = inlined_call_operand.hbm [shape: f32[128,256], index: 2, kind: input, shape index: {}]   ;;  %s2632_s3 = inlined_call_operand.hbm [shape: f32[128,256], index: 3, kind: input, shape index: {}]   ;;  %s2633_s4 = inlined_call_operand.vmem [shape: f32[1,256], index: 4, kind: input, shape index: {}]   ;;  %s2634_s5 = inlined_call_operand.hbm [shape: f32[256,128], index: 5, kind: input, shape index: {}]   ;;  %s2635_s6 = inlined_call_operand.hbm [shape: f32[256,128], index: 6, kind: input, shape index: {}]   ;;  %s2636_s7 = inlined_call_operand.hbm [shape: f32[256,128], index: 7, kind: input, shape index: {}]   ;;  %s2637_s8 = inlined_call_operand.vmem [shape: f32[1,128], index: 8, kind: input, shape index: {}]   ;;  %s2638_s9 = inlined_call_operand.hbm [shape: f32[128,128], index: 9, kind: input, shape index: {}]   ;;  %s2639_s10 = inlined_call_operand.vmem [shape: f32[1,128], index: 10, kind: input, shape index: {}]   ;;  %s2640_s11 = inlined_call_operand.vmem [shape: f32[1,128], index: 11, kind: input, shape index: {}]   ;;  %s2641_s12 = inlined_call_operand.hbm [shape: f32[32,128], index: 12, kind: output, shape index: {}]  }
   0x1   :  { %18 = vsyncpa [#allocation6], 0 }
   0x2   :  { %19 = vsyncpa [#allocation9], 0 }
   0x3   :  { %20 = vsyncpa [#allocation12], 0 }
   0x4   :  { %21 = vsyncpa [#allocation15], 0 }
   0x5   :  { %22 = vsyncpa [#allocation4], 0  ;;  %s2119_s21 = smov [#allocation5]   ;;  %s1909_s25 = scalar_lea.hbm %s2630_s1, 4096 }
   0x6   :  { %s40_s22 = sshll.u32 %s2119_s21, 4  ;;  %p1910_p0 = scmp.ne.s32.totalorder %s2630_s1, %s1909_s25  ;;  %s41_s22 = int_to_ptr.vmem [resolvable:$true] %s40_s22 }
   0x7   :  { %p1913_p1 = scmp.lt.u32.totalorder %s1909_s25, %s2630_s1 }
   0x9   :  { %p1915_p2 = pnand %p1913_p1, %p1910_p0 }
   0xb   :  { %1918 = shalt.err (!%p1915_p2)
}
   0xc   :  { %s1919_s30 = scalar_lea.vmem %s41_s22, 4096  ;;  %p1924_p4 = scmp.lt.s32.totalorder %s41_s22, %s41_s22 }
   0xd   :  { %p1920_p3 = scmp.ne.s32.totalorder %s41_s22, %s1919_s30  ;;  %p1925_p5 = scmp.lt.s32.totalorder %s1919_s30, %s1919_s30 }
   0xf   :  { %p1926_p6 = por %p1925_p5, %p1924_p4 }
  0x11   :  { %p1927_p7 = pnand %p1926_p6, %p1920_p3 }
  0x13   :  { %1930 = shalt.err (!%p1927_p7)
}
  0x14   :  { %s2120_s13 = smov 256   ;;  %s2121_s14 = smov 16  }
  0x15   :  { %46 = dma.hbm_to_vmem [thread:$0]  %s2630_s1, 4096, %s41_s22, [#allocation6], %s2120_s13, %s2120_s13, %s2121_s14  }
  0x16   :  { %s2122_s17 = smov [#allocation8]   ;;  %s1931_s21 = scalar_lea.hbm %s2632_s3, 4096 }
  0x17   :  { %s64_s18 = sshll.u32 %s2122_s17, 4  ;;  %p1932_p8 = scmp.ne.s32.totalorder %s2632_s3, %s1931_s21  ;;  %s65_s18 = int_to_ptr.vmem [resolvable:$true] %s64_s18 }
  0x18   :  { %p1935_p9 = scmp.lt.u32.totalorder %s1931_s21, %s2632_s3 }
  0x1a   :  { %p1937_p10 = pnand %p1935_p9, %p1932_p8 }
  0x1c   :  { %1940 = shalt.err (!%p1937_p10)
}
  0x1d   :  { %s1941_s27 = scalar_lea.vmem %s65_s18, 4096  ;;  %p1946_p12 = scmp.lt.s32.totalorder %s65_s18, %s65_s18 }
  0x1e   :  { %p1942_p11 = scmp.ne.s32.totalorder %s65_s18, %s1941_s27  ;;  %p1947_p13 = scmp.lt.s32.totalorder %s1941_s27, %s1941_s27 }
  0x20   :  { %p1948_p0 = por %p1947_p13, %p1946_p12 }
  0x22   :  { %p1949_p1 = pnand %p1948_p0, %p1942_p11 }
  0x24   :  { %1952 = shalt.err (!%p1949_p1)
}
  0x25   :  { %70 = dma.hbm_to_vmem [thread:$0]  %s2632_s3, 4096, %s65_s18, [#allocation9], %s2120_s13, %s2120_s13, %s2121_s14  }
  0x26   :  { %s2123_s28 = smov [#allocation11]   ;;  %s2124_s30 = smov [#allocation2]  }
  0x27   :  { %s90_s29 = sshll.u32 %s2123_s28, 4  ;;  %s28_s15 = sshll.u32 %s2124_s30, 4  ;;  %s91_s29 = int_to_ptr.vmem [resolvable:$true] %s90_s29  ;;  %s2228_s15 = int_to_ptr.vmem [resolvable:$true] %s28_s15 }
  0x28   :  { %s1953_s19 = scalar_lea.hbm %s2635_s6, 4096 }
  0x29   :  { %p1954_p2 = scmp.ne.s32.totalorder %s2635_s6, %s1953_s19  ;;  %p1957_p3 = scmp.lt.u32.totalorder %s1953_s19, %s2635_s6 }
  0x2b   :  { %p1959_p4 = pnand %p1957_p3, %p1954_p2 }
  0x2d   :  { %1962 = shalt.err (!%p1959_p4)
}
  0x2e   :  { %s1963_s3 = scalar_lea.vmem %s91_s29, 4096  ;;  %p1968_p6 = scmp.lt.s32.totalorder %s91_s29, %s91_s29 }
  0x2f   :  { %p1964_p5 = scmp.ne.s32.totalorder %s91_s29, %s1963_s3  ;;  %p1969_p7 = scmp.lt.s32.totalorder %s1963_s3, %s1963_s3 }
  0x31   :  { %p1970_p8 = por %p1969_p7, %p1968_p6 }
  0x33   :  { %p1971_p9 = pnand %p1970_p8, %p1964_p5 }
  0x35   :  { %1974 = shalt.err (!%p1971_p9)
}
  0x36   :  { %s2125_s18 = smov 128   ;;  %s2126_s25 = smov 8  }
  0x37   :  { %96 = dma.hbm_to_vmem [thread:$0]  %s2635_s6, 4096, %s91_s29, [#allocation12], %s2125_s18, %s2125_s18, %s2126_s25  }
  0x38   :  { %s1975_s28 = scalar_lea.hbm %s2629_s0, 512 }
  0x39   :  { %p1976_p10 = scmp.ne.s32.totalorder %s2629_s0, %s1975_s28  ;;  %p1979_p11 = scmp.lt.u32.totalorder %s1975_s28, %s2629_s0 }
  0x3b   :  { %p1981_p12 = pnand %p1979_p11, %p1976_p10 }
  0x3d   :  { %1984 = shalt.err (!%p1981_p12)
}
  0x3e   :  { %s1985_s20 = scalar_lea.vmem %s2228_s15, 512  ;;  %p1990_p0 = scmp.lt.s32.totalorder %s2228_s15, %s2228_s15 }
  0x3f   :  { %p1986_p13 = scmp.ne.s32.totalorder %s2228_s15, %s1985_s20  ;;  %p1991_p1 = scmp.lt.s32.totalorder %s1985_s20, %s1985_s20 }
  0x41   :  { %p1992_p2 = por %p1991_p1, %p1990_p0 }
  0x43   :  { %p1993_p3 = pnand %p1992_p2, %p1986_p13 }
  0x45   :  { %1996 = shalt.err (!%p1993_p3)
}
  0x46   :  { %34 = dma.hbm_to_vmem [thread:$0]  %s2629_s0, 512, %s2228_s15, [#allocation3], %s2125_s18, %s2125_s18, %s2126_s25  }
  0x47   :  { %s2127_s21 = smov [#allocation7]   ;;  %s2128_s24 = smov [#allocation10]  }
  0x48   :  { %s52_s23 = sshll.u32 %s2127_s21, 4  ;;  %s78_s3 = sshll.u32 %s2128_s24, 4  ;;  %s53_s23 = int_to_ptr.vmem [resolvable:$true] %s52_s23  ;;  %s2265_s3 = int_to_ptr.vmem [resolvable:$true] %s78_s3 }
  0x49   :  { %s1997_s1 = scalar_lea.hbm %s2631_s2, 4096 }
  0x4a   :  { %p1998_p4 = scmp.ne.s32.totalorder %s2631_s2, %s1997_s1  ;;  %p2001_p5 = scmp.lt.u32.totalorder %s1997_s1, %s2631_s2 }
  0x4c   :  { %p2003_p6 = pnand %p2001_p5, %p1998_p4 }
  0x4e   :  { %2006 = shalt.err (!%p2003_p6)
}
  0x4f   :  { %s2007_s0 = scalar_lea.vmem %s53_s23, 4096  ;;  %p2012_p8 = scmp.lt.s32.totalorder %s53_s23, %s53_s23 }
  0x50   :  { %p2008_p7 = scmp.ne.s32.totalorder %s53_s23, %s2007_s0  ;;  %p2013_p9 = scmp.lt.s32.totalorder %s2007_s0, %s2007_s0 }
  0x52   :  { %p2014_p10 = por %p2013_p9, %p2012_p8 }
  0x54   :  { %p2015_p11 = pnand %p2014_p10, %p2008_p7 }
  0x56   :  { %2018 = shalt.err (!%p2015_p11)
}
  0x57   :  { %58 = dma.hbm_to_vmem [thread:$0]  %s2631_s2, 4096, %s53_s23, [#allocation6], %s2120_s13, %s2120_s13, %s2121_s14  }
  0x58   :  { %s2019_s6 = scalar_lea.hbm %s2634_s5, 4096 }
  0x59   :  { %p2020_p12 = scmp.ne.s32.totalorder %s2634_s5, %s2019_s6  ;;  %p2023_p13 = scmp.lt.u32.totalorder %s2019_s6, %s2634_s5 }
  0x5b   :  { %p2025_p0 = pnand %p2023_p13, %p2020_p12 }
  0x5d   :  { %2028 = shalt.err (!%p2025_p0)
}
  0x5e   :  { %s2029_s27 = scalar_lea.vmem %s2265_s3, 4096  ;;  %p2034_p2 = scmp.lt.s32.totalorder %s2265_s3, %s2265_s3 }
  0x5f   :  { %p2030_p1 = scmp.ne.s32.totalorder %s2265_s3, %s2029_s27  ;;  %p2035_p3 = scmp.lt.s32.totalorder %s2029_s27, %s2029_s27 }
  0x61   :  { %p2036_p4 = por %p2035_p3, %p2034_p2 }
  0x63   :  { %p2037_p5 = pnand %p2036_p4, %p2030_p1 }
  0x65   :  { %2040 = shalt.err (!%p2037_p5)
}
  0x66   :  { %84 = dma.hbm_to_vmem [thread:$0]  %s2634_s5, 4096, %s2265_s3, [#allocation9], %s2125_s18, %s2125_s18, %s2126_s25  }
  0x67   :  { %s2129_s14 = smov [#allocation13]   ;;  %s2130_s1 = smov [#allocation14]  }
  0x68   :  { %s102_s23 = sshll.u32 %s2129_s14, 4  ;;  %s116_s22 = sshll.u32 %s2130_s1, 4  ;;  %s103_s23 = int_to_ptr.vmem [resolvable:$true] %s102_s23  ;;  %s2302_s22 = int_to_ptr.vmem [resolvable:$true] %s116_s22 }
  0x69   :  { %s2041_s16 = scalar_lea.hbm %s2636_s7, 4096 }
  0x6a   :  { %p2042_p6 = scmp.ne.s32.totalorder %s2636_s7, %s2041_s16  ;;  %p2045_p7 = scmp.lt.u32.totalorder %s2041_s16, %s2636_s7 }
  0x6c   :  { %p2047_p8 = pnand %p2045_p7, %p2042_p6 }
  0x6e   :  { %2050 = shalt.err (!%p2047_p8)
}
  0x6f   :  { %s2051_s5 = scalar_lea.vmem %s103_s23, 4096  ;;  %p2056_p10 = scmp.lt.s32.totalorder %s103_s23, %s103_s23 }
  0x70   :  { %p2052_p9 = scmp.ne.s32.totalorder %s103_s23, %s2051_s5  ;;  %p2057_p11 = scmp.lt.s32.totalorder %s2051_s5, %s2051_s5 }
  0x72   :  { %p2058_p12 = por %p2057_p11, %p2056_p10 }
  0x74   :  { %p2059_p13 = pnand %p2058_p12, %p2052_p9 }
  0x76   :  { %2062 = shalt.err (!%p2059_p13)
}
  0x77   :  { %108 = dma.hbm_to_vmem [thread:$0]  %s2636_s7, 4096, %s103_s23, [#allocation12], %s2125_s18, %s2125_s18, %s2126_s25  }
  0x78   :  { %s2063_s21 = scalar_lea.hbm %s2638_s9, 2048 }
  0x79   :  { %p2064_p0 = scmp.ne.s32.totalorder %s2638_s9, %s2063_s21  ;;  %p2067_p1 = scmp.lt.u32.totalorder %s2063_s21, %s2638_s9 }
  0x7b   :  { %p2069_p2 = pnand %p2067_p1, %p2064_p0 }
  0x7d   :  { %2072 = shalt.err (!%p2069_p2)
}
  0x7e   :  { %s2073_s13 = scalar_lea.vmem %s2302_s22, 2048  ;;  %p2078_p4 = scmp.lt.s32.totalorder %s2302_s22, %s2302_s22 }
  0x7f   :  { %p2074_p3 = scmp.ne.s32.totalorder %s2302_s22, %s2073_s13  ;;  %p2079_p5 = scmp.lt.s32.totalorder %s2073_s13, %s2073_s13 }
  0x81   :  { %p2080_p6 = por %p2079_p5, %p2078_p4 }
  0x83   :  { %p2081_p7 = pnand %p2080_p6, %p2074_p3 }
  0x85   :  { %2084 = shalt.err (!%p2081_p7)
}
  0x86   :  { %122 = dma.hbm_to_vmem [thread:$0]  %s2638_s9, 2048, %s2302_s22, [#allocation15], %s2125_s18, %s2125_s18, %s2126_s25  }
  0x87   :  { %2107 = dma.done.wait [#allocation3], 512  }
  0x88   :  { %2108 = vsyncadd [#allocation3], 4294966784 }
  0x89   :  { %2109 = dma.done.wait [#allocation6], 8192  }
  0x8a   :  { %2110 = vsyncadd [#allocation6], 4294959104 }
  0x8b   :  { %2111 = dma.done.wait [#allocation9], 8192  }
  0x8c   :  { %2112 = vsyncadd [#allocation9], 4294959104 }
  0x8d   :  { %2113 = dma.done.wait [#allocation12], 8192  }
  0x8e   :  { %2114 = vsyncadd [#allocation12], 4294959104 }
  0x8f   :  { %2115 = dma.done.wait [#allocation15], 2048  }
  0x90   :  { %2116 = vsyncadd [#allocation15], 4294965248  ;;  %v2131_v0 = vmov 0.0   ;;  %v270_v1 = vld [vmem:[#allocation7 + $0x8] sm:$0xff]  ;;  %v272_v2 = vld [vmem:[#allocation7 + $0x18] sm:$0xff]  ;;  %v155_v39 = vlaneseq }
  0x91   :  { %365 = vmatprep.mubr.f32.mxu0 %v2131_v0  ;;  %v269_v3 = vld [vmem:[#allocation7] sm:$0xff]  ;;  %v1611_v4 = vpack.c.bf16 %v272_v2, %v270_v1  ;;  %v271_v5 = vld [vmem:[#allocation7 + $0x10] sm:$0xff]  ;;  %v274_v6 = vld [vmem:[#allocation7 + $0x28] sm:$0xff] }
  0x92   :  { %v276_v7 = vld [vmem:[#allocation7 + $0x38] sm:$0xff]  ;;  %v1613_v8 = vpack.c.bf16 %v271_v5, %v269_v3  ;;  %v273_v10 = vld [vmem:[#allocation7 + $0x20] sm:$0xff]  ;;  %v275_v11 = vld [vmem:[#allocation7 + $0x30] sm:$0xff]  ;;  %v2340_v47 = vshrl.u32 %v155_v39, 7 }
  0x93   :  { %v1615_v9 = vpack.c.bf16 %v276_v7, %v274_v6  ;;  %v278_v12 = vld [vmem:[#allocation7 + $0x48] sm:$0xff]  ;;  %1612 = vmatprep.subr.bf16.mxu0 %v1611_v4  ;;  %v280_v13 = vld [vmem:[#allocation7 + $0x58] sm:$0xff]  ;;  %v1617_v14 = vpack.c.bf16 %v275_v11, %v273_v10  ;;  %v277_v16 = vld [vmem:[#allocation7 + $0x40] sm:$0xff] }
  0x94   :  { %1614 = vmatpush1.bf16.msra.mxu0 %v1613_v8  ;;  %v1619_v15 = vpack.c.bf16 %v280_v13, %v278_v12  ;;  %v279_v17 = vld [vmem:[#allocation7 + $0x50] sm:$0xff]  ;;  %v282_v18 = vld [vmem:[#allocation7 + $0x68] sm:$0xff]  ;;  %v284_v19 = vld [vmem:[#allocation7 + $0x78] sm:$0xff]  ;;  %v2347_v54 = vadd.s32 8, %v2340_v47  ;;  %v164_v56 = vand.u32 7, %v2340_v47  ;;  %vm252_vm0 = vcmp.lt.s32.totalorder %v2340_v47, 1 }
  0x95   :  { %1616 = vmatprep.subr.bf16.mxu0 %v1615_v9  ;;  %v1621_v20 = vpack.c.bf16 %v279_v17, %v277_v16  ;;  %v1623_v21 = vpack.c.bf16 %v284_v19, %v282_v18  ;;  %v281_v22 = vld [vmem:[#allocation7 + $0x60] sm:$0xff]  ;;  %v283_v23 = vld [vmem:[#allocation7 + $0x70] sm:$0xff]  ;;  %v286_v24 = vld [vmem:[#allocation7 + $0x88] sm:$0xff]  ;;  %v2357_v4 = vadd.s32 16, %v2340_v47  ;;  %vm483_vm5 = vcmp.lt.s32.totalorder %v2340_v47, 7 }
  0x96   :  { %v288_v25 = vld [vmem:[#allocation7 + $0x98] sm:$0xff]  ;;  %v1625_v26 = vpack.c.bf16 %v283_v23, %v281_v22  ;;  %v285_v28 = vld [vmem:[#allocation7 + $0x80] sm:$0xff]  ;;  %v287_v29 = vld [vmem:[#allocation7 + $0x90] sm:$0xff]  ;;  %v171_v3 = vand.u32 7, %v2347_v54  ;;  %vm2361_vm1 = vcmp.ne.s32.totalorder %v164_v56, 0  ;;  %v2382_v22 = vadd.s32 24, %v2340_v47 }
  0x97   :  { %v1627_v27 = vpack.c.bf16 %v288_v25, %v286_v24  ;;  %v290_v30 = vld [vmem:[#allocation7 + $0xa8] sm:$0xff]  ;;  %v292_v31 = vld [vmem:[#allocation7 + $0xb8] sm:$0xff]  ;;  %v1629_v32 = vpack.c.bf16 %v287_v29, %v285_v28  ;;  %v289_v34 = vld [vmem:[#allocation7 + $0xa0] sm:$0xff]  ;;  %vm2429_vm6 = vcmp.ne.s32.totalorder %v164_v56, 7 }
  0x98   :  { %1618 = vmatpush1.bf16.msra.mxu0 %v1617_v14  ;;  %v1631_v33 = vpack.c.bf16 %v292_v31, %v290_v30  ;;  %v291_v35 = vld [vmem:[#allocation7 + $0xb0] sm:$0xff]  ;;  %v294_v36 = vld [vmem:[#allocation7 + $0xc8] sm:$0xff]  ;;  %v296_v37 = vld [vmem:[#allocation7 + $0xd8] sm:$0xff]  ;;  %vm2376_vm2 = vcmp.ne.s32.totalorder %v171_v3, 0  ;;  %vm2441_vm7 = vcmp.ne.s32.totalorder %v171_v3, 7 }
  0x99   :  { %1620 = vmatprep.subr.bf16.mxu0 %v1619_v15  ;;  %v1633_v38 = vpack.c.bf16 %v291_v35, %v289_v34  ;;  %v1635_v40 = vpack.c.bf16 %v296_v37, %v294_v36  ;;  %v293_v41 = vld [vmem:[#allocation7 + $0xc0] sm:$0xff]  ;;  %v295_v42 = vld [vmem:[#allocation7 + $0xd0] sm:$0xff]  ;;  %v298_v43 = vld [vmem:[#allocation7 + $0xe8] sm:$0xff] }
  0x9a   :  { %v300_v44 = vld [vmem:[#allocation7 + $0xf8] sm:$0xff]  ;;  %v1637_v45 = vpack.c.bf16 %v295_v42, %v293_v41  ;;  %v297_v46 = vld [vmem:[#allocation7 + $0xe0] sm:$0xff]  ;;  %v299_v49 = vld [vmem:[#allocation7 + $0xf0] sm:$0xff] }
  0x9b   :  { %v1639_v48 = vpack.c.bf16 %v300_v44, %v298_v43  ;;  %v2342_v50 = vld [vmem:[#allocation2] sm:$0xff]  ;;  %v2344_v51 = vld [vmem:[#allocation2 + $0x18] sm:$0xff]  ;;  %v217_v52 = vld [vmem:[#allocation5 + $0x8] sm:$0xff]  ;;  %v1641_v55 = vpack.c.bf16 %v299_v49, %v297_v46 }
  0x9c   :  { %1622 = vmatpush1.bf16.msra.mxu0 %v1621_v20  ;;  %v219_v53 = vld [vmem:[#allocation5 + $0x18] sm:$0xff]  ;;  %v248_v57 = vrot.slane %v2342_v50, 7  ;;  %v251_v58 = vrot.slane %v2344_v51, 7  ;;  %v216_v60 = vld [vmem:[#allocation5] sm:$0xff]  ;;  %v218_v61 = vld [vmem:[#allocation5 + $0x10] sm:$0xff] }
  0x9d   :  { %1624 = vmatprep.subr.bf16.mxu0 %v1623_v21  ;;  %v1643_v59 = vpack.c.bf16 %v219_v53, %v217_v52  ;;  %v2353_v62 = vld [vmem:[#allocation2 + $0x8] sm:$0xff]  ;;  %v223_v1 = vld [vmem:[#allocation5 + $0x38] sm:$0xff]  ;;  %v220_v2 = vld [vmem:[#allocation5 + $0x20] sm:$0xff]  ;;  %v1645_v7 = vpack.c.bf16 %v218_v61, %v216_v60  ;;  %v178_v21 = vand.u32 7, %v2357_v4 }
  0x9e   :  { %v221_v63 = vld [vmem:[#allocation5 + $0x28] sm:$0xff]  ;;  %v256_v6 = vsel %vm252_vm0, %v251_v58, %v248_v57  ;;  %v222_v8 = vld [vmem:[#allocation5 + $0x30] sm:$0xff]  ;;  %v227_v10 = vld [vmem:[#allocation5 + $0x58] sm:$0xff]  ;;  %v249_v11 = vrot.slane %v2353_v62, 7 }
  0x9f   :  { %v225_v9 = vld [vmem:[#allocation5 + $0x48] sm:$0xff]  ;;  %v1647_v12 = vpack.c.bf16 %v223_v1, %v221_v63  ;;  %v2370_v13 = vld [vmem:[#allocation2 + $0x10] sm:$0xff]  ;;  %v729_v14 = vld [vmem:[#allocation11 + $0x80] sm:$0xff]  ;;  %vm2393_vm3 = vcmp.ne.s32.totalorder %v178_v21, 0  ;;  %vm2453_vm8 = vcmp.ne.s32.totalorder %v178_v21, 7 }
  0xa0   :  { %1626 = vmatpush1.bf16.msra.mxu0 %v1625_v26  ;;  %v730_v15 = vld [vmem:[#allocation11 + $0x88] sm:$0xff]  ;;  %v713_v17 = vld [vmem:[#allocation11] sm:$0xff]  ;;  %v731_v19 = vld [vmem:[#allocation11 + $0x90] sm:$0xff]  ;;  %v255_v28 = vsel %vm252_vm0, %v248_v57, %v249_v11  ;;  %v250_v29 = vrot.slane %v2370_v13, 7 }
  0xa1   :  { %1628 = vmatprep.subr.bf16.mxu0 %v1627_v27  ;;  %v1707_v16 = vpack.c.bf16 %v730_v15, %v729_v14  ;;  %v714_v18 = vld [vmem:[#allocation11 + $0x8] sm:$0xff]  ;;  %v732_v24 = vld [vmem:[#allocation11 + $0x98] sm:$0xff]  ;;  %v715_v25 = vld [vmem:[#allocation11 + $0x10] sm:$0xff]  ;;  %v1649_v27 = vpack.c.bf16 %v222_v8, %v220_v2 }
  0xa2   :  { %v1709_v23 = vpack.c.bf16 %v714_v18, %v713_v17  ;;  %v716_v26 = vld [vmem:[#allocation11 + $0x18] sm:$0xff]  ;;  %v1711_v30 = vpack.c.bf16 %v732_v24, %v731_v19  ;;  %v733_v31 = vld [vmem:[#allocation11 + $0xa0] sm:$0xff]  ;;  %v226_v35 = vld [vmem:[#allocation5 + $0x50] sm:$0xff]  ;;  %v254_v44 = vsel %vm252_vm0, %v249_v11, %v250_v29  ;;  %v253_v60 = vsel %vm252_vm0, %v250_v29, %v251_v58 }
  0xa3   :  { %v224_v34 = vld [vmem:[#allocation5 + $0x40] sm:$0xff]  ;;  %1708 = vmatprep.subr.bf16.mxu1 %v1707_v16  ;;  %v229_v36 = vld [vmem:[#allocation5 + $0x68] sm:$0xff]  ;;  %v231_v37 = vld [vmem:[#allocation5 + $0x78] sm:$0xff] }
  0xa4   :  { %1630 = vmatpush1.bf16.msra.mxu0 %v1629_v32  ;;  %v734_v32 = vld [vmem:[#allocation11 + $0xa8] sm:$0xff]  ;;  %1710 = vmatpush3.bf16.msra.mxu1 %v1709_v23  ;;  %v1653_v42 = vpack.c.bf16 %v226_v35, %v224_v34  ;;  %v1655_v46 = vpack.c.bf16 %v231_v37, %v229_v36  ;;  %v230_v49 = vld [vmem:[#allocation5 + $0x70] sm:$0xff]  ;;  %v235_v53 = vld [vmem:[#allocation5 + $0x98] sm:$0xff] }
  0xa5   :  { %1632 = vmatprep.subr.bf16.mxu0 %v1631_v33  ;;  %v1651_v33 = vpack.c.bf16 %v227_v10, %v225_v9  ;;  %1712 = vmatprep.subr.bf16.mxu1 %v1711_v30  ;;  %v1715_v39 = vpack.c.bf16 %v734_v32, %v733_v31  ;;  %v718_v41 = vld [vmem:[#allocation11 + $0x28] sm:$0xff]  ;;  %v232_v63 = vld [vmem:[#allocation5 + $0x80] sm:$0xff]  ;;  %v234_v1 = vld [vmem:[#allocation5 + $0x90] sm:$0xff] }
  0xa6   :  { %v233_v52 = vld [vmem:[#allocation5 + $0x88] sm:$0xff]  ;;  %v236_v9 = vld [vmem:[#allocation5 + $0xa0] sm:$0xff]  ;;  %v238_v10 = vld [vmem:[#allocation5 + $0xb0] sm:$0xff] }
  0xa7   :  { %v1659_v61 = vpack.c.bf16 %v235_v53, %v233_v52  ;;  %v237_v2 = vld [vmem:[#allocation5 + $0xa8] sm:$0xff]  ;;  %v243_v58 = vld [vmem:[#allocation5 + $0xd8] sm:$0xff]  ;;  %v240_v15 = vld [vmem:[#allocation5 + $0xc0] sm:$0xff] }
  0xa8   :  { %1634 = vmatpush1.bf16.msra.mxu0 %v1633_v38  ;;  %v1713_v38 = vpack.c.bf16 %v716_v26, %v715_v25  ;;  %v241_v11 = vld [vmem:[#allocation5 + $0xc8] sm:$0xff]  ;;  %v242_v16 = vld [vmem:[#allocation5 + $0xd0] sm:$0xff]  ;;  %v247_v18 = vld [vmem:[#allocation5 + $0xf8] sm:$0xff] }
  0xa9   :  { %1636 = vmatprep.subr.bf16.mxu0 %v1635_v40  ;;  %v717_v40 = vld [vmem:[#allocation11 + $0x20] sm:$0xff]  ;;  %v1667_v14 = vpack.c.bf16 %v243_v58, %v241_v11  ;;  %v245_v17 = vld [vmem:[#allocation5 + $0xe8] sm:$0xff]  ;;  %v1669_v19 = vpack.c.bf16 %v242_v16, %v240_v15  ;;  %v246_v25 = vld [vmem:[#allocation5 + $0xf0] sm:$0xff] }
  0xaa   :  { %1714 = vmatpush3.bf16.msra.mxu1 %v1713_v38  ;;  %v1671_v23 = vpack.c.bf16 %v247_v18, %v245_v17  ;;  %v244_v24 = vld [vmem:[#allocation5 + $0xe0] sm:$0xff]  ;;  %v501_v26 = vld [vmem:[#allocation8 + $0x8] sm:$0xff]  ;;  %v502_v31 = vld [vmem:[#allocation8 + $0x10] sm:$0xff] }
  0xab   :  { %1716 = vmatprep.subr.bf16.mxu1 %v1715_v39  ;;  %v500_v30 = vld [vmem:[#allocation8] sm:$0xff]  ;;  %v505_v32 = vld [vmem:[#allocation8 + $0x28] sm:$0xff]  ;;  %v506_v37 = vld [vmem:[#allocation8 + $0x30] sm:$0xff] }
  0xac   :  { %1638 = vmatpush1.bf16.msra.mxu0 %v1637_v45  ;;  %v185_v45 = vand.u32 7, %v2382_v22  ;;  %v1677_v34 = vpack.c.bf16 %v502_v31, %v500_v30  ;;  %v504_v36 = vld [vmem:[#allocation8 + $0x20] sm:$0xff]  ;;  %v509_v38 = vld [vmem:[#allocation8 + $0x48] sm:$0xff]  ;;  %v511_v39 = vld [vmem:[#allocation8 + $0x58] sm:$0xff] }
  0xad   :  { %1640 = vmatprep.subr.bf16.mxu0 %v1639_v48  ;;  %v228_v48 = vld [vmem:[#allocation5 + $0x60] sm:$0xff]  ;;  %v522_v11 = vld [vmem:[#allocation8 + $0xb0] sm:$0xff]  ;;  %v525_v58 = vld [vmem:[#allocation8 + $0xc8] sm:$0xff] }
  0xae   :  { %v1657_v57 = vpack.c.bf16 %v230_v49, %v228_v48  ;;  %vm2405_vm4 = vcmp.ne.s32.totalorder %v185_v45, 0  ;;  %v515_v48 = vld [vmem:[#allocation8 + $0x78] sm:$0xff]  ;;  %v512_v53 = vld [vmem:[#allocation8 + $0x60] sm:$0xff]  ;;  %v526_v17 = vld [vmem:[#allocation8 + $0xd0] sm:$0xff]  ;;  %vm2464_vm9 = vcmp.ne.s32.totalorder %v185_v45, 7 }
  0xaf   :  { %v524_v16 = vld [vmem:[#allocation8 + $0xc0] sm:$0xff]  ;;  %v529_v18 = vld [vmem:[#allocation8 + $0xe8] sm:$0xff]  ;;  %v735_v4 = vld [vmem:[#allocation11 + $0xb0] sm:$0xff] }
  0xb0   :  { %1642 = vmatpush1.bf16.msra.mxu0 %v1641_v55  ;;  %v1717_v55 = vpack.c.bf16 %v718_v41, %v717_v40  ;;  %v1681_v40 = vpack.c.bf16 %v506_v37, %v504_v36  ;;  %v1683_v41 = vpack.c.bf16 %v511_v39, %v509_v38  ;;  %v736_v21 = vld [vmem:[#allocation11 + $0xb8] sm:$0xff]  ;;  %v738_v22 = vld [vmem:[#allocation11 + $0xc8] sm:$0xff]  ;;  %v721_v37 = vld [vmem:[#allocation11 + $0x40] sm:$0xff] }
  0xb1   :  { %1644 = vmatprep.subr.bf16.mxu0 %v1643_v59  ;;  %v722_v38 = vld [vmem:[#allocation11 + $0x48] sm:$0xff]  ;;  %v1075_v30 = vld [vmem:[#allocation14] sm:$0xff] }
  0xb2   :  { %1718 = vmatpush3.bf16.msra.mxu1 %v1717_v55  ;;  %v514_v55 = vld [vmem:[#allocation8 + $0x70] sm:$0xff]  ;;  %v1725_v39 = vpack.c.bf16 %v722_v38, %v721_v37 }
  0xb3   :  { %1336 = vmatmul.mubr.msk.f32.vlgmr.msra.gmra.mrb[0].mxu0 %vm2361_vm1, %v256_v6  ;;  %v239_v6 = vld [vmem:[#allocation5 + $0xb8] sm:$0xff] }
  0xb4   :  { %1646 = vmatpush1.bf16.msra.mxu0 %v1645_v7  ;;  %371 = vmatprep.mubr.f32.mxu0 %v2131_v0  ;;  %v1661_v7 = vpack.c.bf16 %v234_v1, %v232_v63  ;;  %v1663_v8 = vpack.c.bf16 %v239_v6, %v237_v2  ;;  %v516_v1 = vld [vmem:[#allocation8 + $0x80] sm:$0xff]  ;;  %v518_v2 = vld [vmem:[#allocation8 + $0x90] sm:$0xff]  ;;  %v521_v6 = vld [vmem:[#allocation8 + $0xa8] sm:$0xff] }
  0xb5   :  { %1648 = vmatprep.subr.bf16.mxu0 %v1647_v12  ;;  %v1665_v12 = vpack.c.bf16 %v238_v10, %v236_v9  ;;  %v520_v10 = vld [vmem:[#allocation8 + $0xa0] sm:$0xff] }
  0xb7   :  { %1337 = vmatmul.mubr.msk.f32.gmra.mrb[2].mxu0 %vm2376_vm2, %v255_v28  ;;  %v1673_v28 = vpack.c.bf16 %v246_v25, %v244_v24  ;;  %v528_v25 = vld [vmem:[#allocation8 + $0xe0] sm:$0xff] }
  0xb8   :  { %1650 = vmatpush1.bf16.msra.mxu0 %v1649_v27  ;;  %377 = vmatprep.mubr.f32.mxu0 %v2131_v0  ;;  %v503_v27 = vld [vmem:[#allocation8 + $0x18] sm:$0xff] }
  0xb9   :  { %1652 = vmatprep.subr.bf16.mxu0 %v1651_v33  ;;  %v1675_v29 = vpack.c.bf16 %v503_v27, %v501_v26  ;;  %v507_v33 = vld [vmem:[#allocation8 + $0x38] sm:$0xff]  ;;  %v530_v26 = vld [vmem:[#allocation8 + $0xf0] sm:$0xff] }
  0xba   :  { %v1679_v35 = vpack.c.bf16 %v507_v33, %v505_v32  ;;  %v1705_v27 = vpack.c.bf16 %v530_v26, %v528_v25  ;;  %v481_v32 = vrot.slane %v2370_v13, 1  ;;  %v1719_v33 = vpack.c.bf16 %v736_v21, %v735_v4 }
  0xbb   :  { %1338 = vmatmul.mubr.msk.f32.gmra.mrb[4].mxu0 %vm2393_vm3, %v254_v44  ;;  %v510_v44 = vld [vmem:[#allocation8 + $0x50] sm:$0xff] }
  0xbc   :  { %1654 = vmatpush1.bf16.msra.mxu0 %v1653_v42  ;;  %383 = vmatprep.mubr.f32.mxu0 %v2131_v0  ;;  %v508_v42 = vld [vmem:[#allocation8 + $0x40] sm:$0xff] }
  0xbd   :  { %1656 = vmatprep.subr.bf16.mxu0 %v1655_v46  ;;  %v513_v46 = vld [vmem:[#allocation8 + $0x68] sm:$0xff]  ;;  %v1685_v49 = vpack.c.bf16 %v510_v44, %v508_v42  ;;  %1720 = vmatprep.subr.bf16.mxu1 %v1719_v33  ;;  %v723_v44 = vld [vmem:[#allocation11 + $0x50] sm:$0xff] }
  0xbe   :  { %v1687_v52 = vpack.c.bf16 %v515_v48, %v513_v46  ;;  %v724_v46 = vld [vmem:[#allocation11 + $0x58] sm:$0xff] }
  0xbf   :  { %1339 = vmatmul.mubr.msk.f32.gmra.mrb[6].mxu0 %vm2405_vm4, %v253_v60  ;;  %v519_v60 = vld [vmem:[#allocation8 + $0x98] sm:$0xff]  ;;  %v1729_v48 = vpack.c.bf16 %v724_v46, %v723_v44 }
  0xc0   :  { %1658 = vmatpush1.bf16.msra.mxu0 %v1657_v57  ;;  %454 = vmatprep.mubr.f32.mxu0 %v2131_v0  ;;  %v517_v57 = vld [vmem:[#allocation8 + $0x88] sm:$0xff] }
  0xc1   :  { %1660 = vmatprep.subr.bf16.mxu0 %v1659_v61  ;;  %v1689_v61 = vpack.c.bf16 %v514_v55, %v512_v53  ;;  %v1691_v63 = vpack.c.bf16 %v519_v60, %v517_v57  ;;  %v725_v55 = vld [vmem:[#allocation11 + $0x60] sm:$0xff]  ;;  %v726_v57 = vld [vmem:[#allocation11 + $0x68] sm:$0xff] }
  0xc2   :  { %v1733_v60 = vpack.c.bf16 %v726_v57, %v725_v55  ;;  %v657_v55 = vld [vmem:[#allocation10] sm:$0xff] }
  0xc4   :  { %1662 = vmatpush1.bf16.msra.mxu0 %v1661_v7  ;;  %v523_v7 = vld [vmem:[#allocation8 + $0xb8] sm:$0xff] }
  0xc5   :  { %1664 = vmatprep.subr.bf16.mxu0 %v1663_v8  ;;  %v1693_v8 = vpack.c.bf16 %v518_v2, %v516_v1  ;;  %v1695_v9 = vpack.c.bf16 %v523_v7, %v521_v6  ;;  %v727_v2 = vld [vmem:[#allocation11 + $0x70] sm:$0xff]  ;;  %v728_v6 = vld [vmem:[#allocation11 + $0x78] sm:$0xff] }
  0xc6   :  { %v1737_v7 = vpack.c.bf16 %v728_v6, %v727_v2 }
  0xc8   :  { %1666 = vmatpush1.bf16.msra.mxu0 %v1665_v12  ;;  %v527_v12 = vld [vmem:[#allocation8 + $0xd8] sm:$0xff] }
  0xc9   :  { %1668 = vmatprep.subr.bf16.mxu0 %v1667_v14  ;;  %v1697_v14 = vpack.c.bf16 %v522_v11, %v520_v10  ;;  %v1699_v15 = vpack.c.bf16 %v527_v12, %v525_v58  ;;  %v633_v11 = vsub.s32 0, %v2340_v47  ;;  %v629_v58 = vld [vmem:[%s2633_s4] sm:$0x3]  ;;  %v637_v12 = vsub.s32 1, %v2340_v47  ;;  %v679_v47 = vld [vmem:[#allocation10 + $0xb0] sm:$0xff] }
  0xcc   :  { %1670 = vmatpush1.bf16.msra.mxu0 %v1669_v19  ;;  %v531_v19 = vld [vmem:[#allocation8 + $0xf8] sm:$0xff] }
  0xcd   :  { %1672 = vmatprep.subr.bf16.mxu0 %v1671_v23  ;;  %v1701_v23 = vpack.c.bf16 %v526_v17, %v524_v16  ;;  %v1703_v24 = vpack.c.bf16 %v531_v19, %v529_v18 }
  0xd0   :  { %1674 = vmatpush1.bf16.msra.mxu0 %v1673_v28  ;;  %v479_v28 = vrot.slane %v2342_v50, 1 }
  0xd1   :  { %1676 = vmatprep.subr.bf16.mxu0 %v1675_v29  ;;  %v480_v29 = vrot.slane %v2353_v62, 1 }
  0xd3   :  { %455 = vmatmul.mubr.f32.vlgmr.msra.gmra.mrb[0].mxu0 %v2342_v50  ;;  %v486_v31 = vsel %vm483_vm5, %v479_v28, %v480_v29  ;;  %v485_v56 = vsel %vm483_vm5, %v480_v29, %v481_v32 }
  0xd4   :  { %1678 = vmatpush1.bf16.msra.mxu0 %v1677_v34  ;;  %460 = vmatprep.mubr.f32.mxu0 %v2131_v0  ;;  %v719_v34 = vld [vmem:[#allocation11 + $0x30] sm:$0xff] }
  0xd5   :  { %1680 = vmatprep.subr.bf16.mxu0 %v1679_v35  ;;  %v720_v35 = vld [vmem:[#allocation11 + $0x38] sm:$0xff] }
  0xd6   :  { %v1721_v36 = vpack.c.bf16 %v720_v35, %v719_v34 }
  0xd7   :  { %461 = vmatmul.mubr.f32.gmra.mrb[2].mxu0 %v2353_v62  ;;  %v482_v62 = vrot.slane %v2344_v51, 1 }
  0xd8   :  { %1682 = vmatpush1.bf16.msra.mxu0 %v1681_v40  ;;  %466 = vmatprep.mubr.f32.mxu0 %v2131_v0  ;;  %v739_v40 = vld [vmem:[#allocation11 + $0xd0] sm:$0xff] }
  0xd9   :  { %1684 = vmatprep.subr.bf16.mxu0 %v1683_v41  ;;  %v484_v54 = vsel %vm483_vm5, %v481_v32, %v482_v62  ;;  %v487_v3 = vsel %vm483_vm5, %v482_v62, %v479_v28  ;;  %1722 = vmatpush3.bf16.msra.mxu1 %v1721_v36  ;;  %v740_v41 = vld [vmem:[#allocation11 + $0xd8] sm:$0xff] }
  0xda   :  { %v1727_v42 = vpack.c.bf16 %v740_v41, %v739_v40 }
  0xdb   :  { %467 = vmatmul.mubr.f32.gmra.mrb[4].mxu0 %v2370_v13  ;;  %v1079_v13 = vld [vmem:[#allocation14 + $0x20] sm:$0xff] }
  0xdc   :  { %1686 = vmatpush1.bf16.msra.mxu0 %v1685_v49  ;;  %472 = vmatprep.mubr.f32.mxu0 %v2131_v0  ;;  %v741_v49 = vld [vmem:[#allocation11 + $0xe0] sm:$0xff] }
  0xdd   :  { %1688 = vmatprep.subr.bf16.mxu0 %v1687_v52  ;;  %v742_v52 = vld [vmem:[#allocation11 + $0xe8] sm:$0xff] }
  0xde   :  { %v1731_v53 = vpack.c.bf16 %v742_v52, %v741_v49 }
  0xdf   :  { %473 = vmatmul.mubr.f32.gmra.mrb[6].mxu0 %v2344_v51 }
  0xe0   :  { %1690 = vmatpush1.bf16.msra.mxu0 %v1689_v61  ;;  %596 = vmatprep.mubr.f32.mxu0 %v2131_v0  ;;  %v743_v61 = vld [vmem:[#allocation11 + $0xf0] sm:$0xff] }
  0xe1   :  { %1692 = vmatprep.subr.bf16.mxu0 %v1691_v63  ;;  %v744_v63 = vld [vmem:[#allocation11 + $0xf8] sm:$0xff] }
  0xe2   :  { %v1735_v1 = vpack.c.bf16 %v744_v63, %v743_v61  ;;  %v675_v61 = vld [vmem:[#allocation10 + $0x90] sm:$0xff]  ;;  %v676_v63 = vld [vmem:[#allocation10 + $0x98] sm:$0xff] }
  0xe4   :  { %1694 = vmatpush1.bf16.msra.mxu0 %v1693_v8  ;;  %v673_v8 = vld [vmem:[#allocation10 + $0x80] sm:$0xff] }
  0xe5   :  { %1696 = vmatprep.subr.bf16.mxu0 %v1695_v9  ;;  %v674_v9 = vld [vmem:[#allocation10 + $0x88] sm:$0xff] }
  0xe6   :  { %v1739_v10 = vpack.c.bf16 %v674_v9, %v673_v8 }
  0xe8   :  { %1698 = vmatpush1.bf16.msra.mxu0 %v1697_v14  ;;  %v634_v14 = vrot.slane %v629_v58, %v633_v11 }
  0xe9   :  { %1700 = vmatprep.subr.bf16.mxu0 %v1699_v15  ;;  %v638_v15 = vrot.slane %v629_v58, %v637_v12 }
  0xec   :  { %1702 = vmatpush1.bf16.msra.mxu0 %v1701_v23 }
  0xed   :  { %1704 = vmatprep.subr.bf16.mxu0 %v1703_v24 }
  0xf0   :  { %1706 = vmatpush1.bf16.msra.mxu0 %v1705_v27 }
  0xf3   :  { %1340 = vmatmul.mubr.msk.f32.vlgmr.msra.gmra.mrb[0].mxu0 %vm2429_vm6, %v486_v31 }
  0xf4   :  { %602 = vmatprep.mubr.f32.mxu0 %v2131_v0 }
  0xf7   :  { %1341 = vmatmul.mubr.msk.f32.gmra.mrb[2].mxu0 %vm2441_vm7, %v485_v56 }
  0xf8   :  { %608 = vmatprep.mubr.f32.mxu0 %v2131_v0 }
  0xfb   :  { %1342 = vmatmul.mubr.msk.f32.gmra.mrb[4].mxu0 %vm2453_vm8, %v484_v54 }
  0xfc   :  { %614 = vmatprep.mubr.f32.mxu0 %v2131_v0  ;;  %v737_v0 = vld [vmem:[#allocation11 + $0xc0] sm:$0xff] }
  0xfd   :  { %v1723_v45 = vpack.c.bf16 %v738_v22, %v737_v0 }
  0xff   :  { %1343 = vmatmul.mubr.msk.f32.gmra.mrb[6].mxu0 %vm2464_vm9, %v487_v3  ;;  %1724 = vmatprep.subr.bf16.mxu1 %v1723_v45 }
 0x100   :  { %1726 = vmatpush3.bf16.msra.mxu1 %v1725_v39 }
 0x101   :  { %1728 = vmatprep.subr.bf16.mxu1 %v1727_v42 }
 0x104   :  { %1730 = vmatpush3.bf16.msra.mxu1 %v1729_v48 }
 0x105   :  { %1732 = vmatprep.subr.bf16.mxu1 %v1731_v53 }
 0x108   :  { %1734 = vmatpush3.bf16.msra.mxu1 %v1733_v60  ;;  %v658_v60 = vld [vmem:[#allocation10 + $0x8] sm:$0xff] }
 0x109   :  { %1736 = vmatprep.subr.bf16.mxu1 %v1735_v1  ;;  %v1741_v12 = vpack.c.bf16 %v658_v60, %v657_v55  ;;  %v686_v55 = vld [vmem:[#allocation10 + $0xe8] sm:$0xff] }
 0x10c   :  { %1738 = vmatpush3.bf16.msra.mxu1 %v1737_v7 }
 0x10d   :  { %1740 = vmatprep.subr.bf16.mxu1 %v1739_v10 }
 0x1c6   :  { %v598_v16 = vpop.f32.mrb[0].mxu0 }
 0x1c7   :  { %v641_v17 = vadd.f32 %v634_v14, %v598_v16  ;;  %v600_v18 = vpop.f32.mrb[1].mxu0 }
 0x1c8   :  { %v642_v19 = vadd.f32 %v638_v15, %v600_v18 }
 0x1c9   :  { %v2477_v23 = vmax.f32 %v641_v17, 0.0 }
 0x1ca   :  { %v604_v24 = vpop.f32.mrb[2].mxu0  ;;  %v2479_v25 = vmax.f32 %v642_v19, 0.0 }
 0x1cb   :  { %v643_v26 = vadd.f32 %v634_v14, %v604_v24  ;;  %v606_v27 = vpop.f32.mrb[3].mxu0  ;;  %v689_v31 = vrot.slane %v2477_v23, 7  ;;  %v915_v32 = vrot.slane %v2477_v23, 1  ;;  %v659_v24 = vld [vmem:[#allocation10 + $0x10] sm:$0xff] }
 0x1cc   :  { %v644_v28 = vadd.f32 %v638_v15, %v606_v27  ;;  %v916_v54 = vrot.slane %v2479_v25, 1  ;;  %v690_v0 = vrot.slane %v2479_v25, 7 }
 0x1cd   :  { %v2481_v29 = vmax.f32 %v643_v26, 0.0  ;;  %v660_v26 = vld [vmem:[#allocation10 + $0x18] sm:$0xff] }
 0x1ce   :  { %v2485_v56 = vmax.f32 %v644_v28, 0.0  ;;  %v610_v62 = vpop.f32.mrb[4].mxu0 }
 0x1cf   :  { %v691_v3 = vrot.slane %v2481_v29, 7  ;;  %v917_v4 = vrot.slane %v2481_v29, 1  ;;  %v645_v21 = vadd.f32 %v634_v14, %v610_v62  ;;  %v612_v33 = vpop.f32.mrb[5].mxu0  ;;  %v678_v62 = vld [vmem:[#allocation10 + $0xa8] sm:$0xff] }
 0x1d0   :  { %v692_v34 = vrot.slane %v2485_v56, 7  ;;  %v918_v35 = vrot.slane %v2485_v56, 1  ;;  %v646_v36 = vadd.f32 %v638_v15, %v612_v33  ;;  %v662_v33 = vld [vmem:[#allocation10 + $0x28] sm:$0xff] }
 0x1d1   :  { %v2493_v22 = vmax.f32 %v645_v21, 0.0  ;;  %v701_v45 = vsel %vm252_vm0, %v689_v31, %v691_v3  ;;  %v2499_v37 = vsel %vm483_vm5, %v915_v32, %v917_v4  ;;  %v661_v21 = vld [vmem:[#allocation10 + $0x20] sm:$0xff] }
 0x1d2   :  { %v2501_v38 = vmax.f32 %v646_v36, 0.0  ;;  %v616_v39 = vpop.f32.mrb[6].mxu0  ;;  %v702_v40 = vsel %vm252_vm0, %v690_v0, %v692_v34  ;;  %v2507_v41 = vsel %vm483_vm5, %v916_v54, %v918_v35  ;;  %v1749_v5 = vpack.c.bf16 %v662_v33, %v661_v21  ;;  %v664_v36 = vld [vmem:[#allocation10 + $0x38] sm:$0xff]  ;;  %v960_v21 = vld [vmem:[#allocation13 + $0xa8] sm:$0xff] }
 0x1d3   :  { %v693_v42 = vrot.slane %v2493_v22, 7  ;;  %v919_v44 = vrot.slane %v2493_v22, 1  ;;  %v647_v46 = vadd.f32 %v634_v14, %v616_v39  ;;  %v618_v48 = vpop.f32.mrb[7].mxu0  ;;  %v1743_v14 = vpack.c.bf16 %v676_v63, %v675_v61  ;;  %v682_v39 = vld [vmem:[#allocation10 + $0xc8] sm:$0xff]  ;;  %v669_v63 = vld [vmem:[#allocation10 + $0x60] sm:$0xff] }
 0x1d4   :  { %v694_v49 = vrot.slane %v2501_v38, 7  ;;  %v920_v52 = vrot.slane %v2501_v38, 1  ;;  %v648_v53 = vadd.f32 %v638_v15, %v618_v48 }
 0x1d5   :  { %v2513_v57 = vmax.f32 %v647_v46, 0.0  ;;  %v699_v1 = vsel %vm252_vm0, %v691_v3, %v693_v42  ;;  %v2519_v2 = vsel %vm483_vm5, %v917_v4, %v919_v44  ;;  %v1745_v3 = vpack.c.bf16 %v660_v26, %v659_v24  ;;  %v684_v46 = vld [vmem:[#allocation10 + $0xd8] sm:$0xff]  ;;  %v957_v24 = vld [vmem:[#allocation13 + $0x90] sm:$0xff] }
 0x1d6   :  { %v2521_v6 = vmax.f32 %v648_v53, 0.0  ;;  %v700_v7 = vsel %vm252_vm0, %v692_v34, %v694_v49  ;;  %v2527_v8 = vsel %vm483_vm5, %v918_v35, %v920_v52  ;;  %v663_v35 = vld [vmem:[#allocation10 + $0x30] sm:$0xff]  ;;  %v685_v53 = vld [vmem:[#allocation10 + $0xe0] sm:$0xff]  ;;  %v958_v26 = vld [vmem:[#allocation13 + $0x98] sm:$0xff] }
 0x1d7   :  { %v695_v9 = vrot.slane %v2513_v57, 7  ;;  %v921_v10 = vrot.slane %v2513_v57, 1  ;;  %v1753_v20 = vpack.c.bf16 %v664_v36, %v663_v35  ;;  %v1763_v61 = vpack.c.bf16 %v686_v55, %v685_v53  ;;  %v962_v35 = vld [vmem:[#allocation13 + $0xb8] sm:$0xff]  ;;  %v951_v55 = vld [vmem:[#allocation13 + $0x60] sm:$0xff] }
 0x1d8   :  { %v922_v11 = vrot.slane %v2521_v6, 1  ;;  %v696_v58 = vrot.slane %v2521_v6, 7 }
 0x1d9   :  { %v703_v15 = vsel %vm252_vm0, %v695_v9, %v689_v31  ;;  %v697_v16 = vsel %vm252_vm0, %v693_v42, %v695_v9  ;;  %v2539_v17 = vsel %vm483_vm5, %v919_v44, %v921_v10  ;;  %v2543_v18 = vsel %vm483_vm5, %v921_v10, %v915_v32  ;;  %v677_v32 = vld [vmem:[#allocation10 + $0xa0] sm:$0xff]  ;;  %v666_v42 = vld [vmem:[#allocation10 + $0x48] sm:$0xff]  ;;  %v683_v44 = vld [vmem:[#allocation10 + $0xd0] sm:$0xff] }
 0x1da   :  { %v704_v19 = vsel %vm252_vm0, %v696_v58, %v690_v0  ;;  %v698_v27 = vsel %vm252_vm0, %v694_v49, %v696_v58  ;;  %v2551_v28 = vsel %vm483_vm5, %v920_v52, %v922_v11  ;;  %v2555_v31 = vsel %vm483_vm5, %v922_v11, %v916_v54  ;;  %v680_v54 = vld [vmem:[#allocation10 + $0xb8] sm:$0xff]  ;;  %v681_v0 = vld [vmem:[#allocation10 + $0xc0] sm:$0xff]  ;;  %v667_v49 = vld [vmem:[#allocation10 + $0x50] sm:$0xff] }
 0x1db   :  { %1344 = vmatprep.mubr.msk.f32.mxu1 %vm2361_vm1, %v704_v19  ;;  %v1747_v4 = vpack.c.bf16 %v678_v62, %v677_v32  ;;  %v1751_v34 = vpack.c.bf16 %v680_v54, %v679_v47  ;;  %v1759_v43 = vpack.c.bf16 %v684_v46, %v683_v44  ;;  %v668_v52 = vld [vmem:[#allocation10 + $0x58] sm:$0xff]  ;;  %v955_v58 = vld [vmem:[#allocation13 + $0x80] sm:$0xff]  ;;  %v940_v19 = vld [vmem:[#allocation13 + $0x8] sm:$0xff]  ;;  %v1775_v32 = vpack.c.bf16 %v958_v26, %v957_v24 }
 0x1dc   :  { %1345 = vmatmul.mubr.msk.f32.vlgmr.msra.gmra.mrb[0].mxu1 %vm2361_vm1, %v703_v15  ;;  %v1761_v60 = vpack.c.bf16 %v668_v52, %v667_v49  ;;  %v688_v9 = vld [vmem:[#allocation10 + $0xf8] sm:$0xff]  ;;  %v941_v62 = vld [vmem:[#allocation13 + $0x10] sm:$0xff]  ;;  %v943_v54 = vld [vmem:[#allocation13 + $0x20] sm:$0xff] }
 0x1dd   :  { %1742 = vmatpush3.bf16.msra.mxu1 %v1741_v12  ;;  %1346 = vmatprep.mubr.msk.f32.mxu1 %vm2376_vm2, %v702_v40  ;;  %v665_v40 = vld [vmem:[#allocation10 + $0x40] sm:$0xff]  ;;  %v672_v11 = vld [vmem:[#allocation10 + $0x78] sm:$0xff]  ;;  %v956_v12 = vld [vmem:[#allocation13 + $0x88] sm:$0xff] }
 0x1de   :  { %1744 = vmatprep.subr.bf16.mxu1 %v1743_v14  ;;  %v1757_v48 = vpack.c.bf16 %v666_v42, %v665_v40  ;;  %v1771_v15 = vpack.c.bf16 %v956_v12, %v955_v58  ;;  %v947_v42 = vld [vmem:[#allocation13 + $0x40] sm:$0xff]  ;;  %v965_v44 = vld [vmem:[#allocation13 + $0xd0] sm:$0xff]  ;;  %v968_v49 = vld [vmem:[#allocation13 + $0xe8] sm:$0xff] }
 0x1df   :  { %v1085_v58 = vld [vmem:[#allocation14 + $0x50] sm:$0xff]  ;;  %v1086_v12 = vld [vmem:[#allocation14 + $0x58] sm:$0xff] }
 0x1e0   :  { %1347 = vmatmul.mubr.msk.f32.gmra.mrb[2].mxu1 %vm2376_vm2, %v701_v45  ;;  %v1755_v45 = vpack.c.bf16 %v682_v39, %v681_v0  ;;  %v945_v39 = vld [vmem:[#allocation13 + $0x30] sm:$0xff]  ;;  %v1090_v26 = vld [vmem:[#allocation14 + $0x78] sm:$0xff] }
 0x1e1   :  { %1746 = vmatpush3.bf16.msra.mxu1 %v1745_v3  ;;  %1348 = vmatprep.mubr.msk.f32.mxu1 %vm2393_vm3, %v700_v7  ;;  %v687_v7 = vld [vmem:[#allocation10 + $0xf0] sm:$0xff]  ;;  %v942_v3 = vld [vmem:[#allocation13 + $0x18] sm:$0xff] }
 0x1e2   :  { %1748 = vmatprep.subr.bf16.mxu1 %v1747_v4  ;;  %v1767_v10 = vpack.c.bf16 %v688_v9, %v687_v7  ;;  %v959_v4 = vld [vmem:[#allocation13 + $0xa0] sm:$0xff]  ;;  %v1777_v33 = vpack.c.bf16 %v942_v3, %v941_v62  ;;  %v954_v7 = vld [vmem:[#allocation13 + $0x78] sm:$0xff]  ;;  %v1089_v24 = vld [vmem:[#allocation14 + $0x70] sm:$0xff] }
 0x1e3   :  { %v1779_v47 = vpack.c.bf16 %v960_v21, %v959_v4 }
 0x1e4   :  { %1349 = vmatmul.mubr.msk.f32.gmra.mrb[4].mxu1 %vm2393_vm3, %v699_v1  ;;  %v670_v1 = vld [vmem:[#allocation10 + $0x68] sm:$0xff] }
 0x1e5   :  { %1750 = vmatpush3.bf16.msra.mxu1 %v1749_v5  ;;  %1350 = vmatprep.mubr.msk.f32.mxu1 %vm2405_vm4, %v698_v27  ;;  %v1765_v59 = vpack.c.bf16 %v670_v1, %v669_v63  ;;  %v944_v5 = vld [vmem:[#allocation13 + $0x28] sm:$0xff] }
 0x1e6   :  { %1752 = vmatprep.subr.bf16.mxu1 %v1751_v34  ;;  %v961_v34 = vld [vmem:[#allocation13 + $0xb0] sm:$0xff]  ;;  %v1781_v36 = vpack.c.bf16 %v944_v5, %v943_v54 }
 0x1e7   :  { %v1783_v0 = vpack.c.bf16 %v962_v35, %v961_v34 }
 0x1e8   :  { %1351 = vmatmul.mubr.msk.f32.gmra.mrb[6].mxu1 %vm2405_vm4, %v697_v16  ;;  %v939_v16 = vld [vmem:[#allocation13] sm:$0xff] }
 0x1e9   :  { %1754 = vmatpush3.bf16.msra.mxu1 %v1753_v20  ;;  %894 = vmatprep.mubr.f32.mxu1 %v2479_v25  ;;  %v671_v25 = vld [vmem:[#allocation10 + $0x70] sm:$0xff]  ;;  %v1773_v27 = vpack.c.bf16 %v940_v19, %v939_v16  ;;  %v963_v20 = vld [vmem:[#allocation13 + $0xc0] sm:$0xff]  ;;  %v1088_v16 = vld [vmem:[#allocation14 + $0x68] sm:$0xff] }
 0x1ea   :  { %1756 = vmatprep.subr.bf16.mxu1 %v1755_v45  ;;  %v1769_v14 = vpack.c.bf16 %v672_v11, %v671_v25  ;;  %v1082_v25 = vld [vmem:[#allocation14 + $0x38] sm:$0xff] }
 0x1ed   :  { %1758 = vmatpush3.bf16.msra.mxu1 %v1757_v48  ;;  %v949_v48 = vld [vmem:[#allocation13 + $0x50] sm:$0xff] }
 0x1ee   :  { %1760 = vmatprep.subr.bf16.mxu1 %v1759_v43  ;;  %v967_v43 = vld [vmem:[#allocation13 + $0xe0] sm:$0xff] }
 0x1ef   :  { %v1795_v53 = vpack.c.bf16 %v968_v49, %v967_v43 }
 0x1f1   :  { %1762 = vmatpush3.bf16.msra.mxu1 %v1761_v60  ;;  %v952_v60 = vld [vmem:[#allocation13 + $0x68] sm:$0xff] }
 0x1f2   :  { %1764 = vmatprep.subr.bf16.mxu1 %v1763_v61  ;;  %v969_v61 = vld [vmem:[#allocation13 + $0xf0] sm:$0xff]  ;;  %v1797_v63 = vpack.c.bf16 %v952_v60, %v951_v55  ;;  %v1360_v55 = vld [vmem:[%s2637_s8] ss:$0 sm:$0xff] }
 0x1f5   :  { %1766 = vmatpush3.bf16.msra.mxu1 %v1765_v59 }
 0x1f6   :  { %1768 = vmatprep.subr.bf16.mxu1 %v1767_v10  ;;  %v1081_v10 = vld [vmem:[#allocation14 + $0x30] sm:$0xff] }
 0x1f7   :  { %v1815_v51 = vpack.c.bf16 %v1082_v25, %v1081_v10 }
 0x1f9   :  { %1770 = vmatpush3.bf16.msra.mxu1 %v1769_v14  ;;  %v1823_v14 = vpack.c.bf16 %v1086_v12, %v1085_v58 }
 0x1fa   :  { %1772 = vmatprep.subr.bf16.mxu1 %v1771_v15  ;;  %v1087_v15 = vld [vmem:[#allocation14 + $0x60] sm:$0xff] }
 0x1fb   :  { %v1827_v19 = vpack.c.bf16 %v1088_v16, %v1087_v15  ;;  %v1908_v15 = vld [vmem:[#allocation2 + $0x18] sm:$0xff] }
 0x1fc   :  { %895 = vmatmul.mubr.f32.vlgmr.msra.gmra.mrb[8].mxu1 %v2477_v23  ;;  %v946_v23 = vld [vmem:[#allocation13 + $0x38] sm:$0xff] }
 0x1fd   :  { %899 = vmatprep.mubr.f32.mxu1 %v2485_v56  ;;  %1774 = vmatpush3.bf16.msra.mxu1 %v1773_v27  ;;  %v964_v56 = vld [vmem:[#allocation13 + $0xc8] sm:$0xff]  ;;  %v1785_v45 = vpack.c.bf16 %v946_v23, %v945_v39  ;;  %v1831_v27 = vpack.c.bf16 %v1090_v26, %v1089_v24 }
 0x1fe   :  { %1776 = vmatprep.subr.bf16.mxu1 %v1775_v32  ;;  %v1787_v40 = vpack.c.bf16 %v964_v56, %v963_v20 }
 0x200   :  { %900 = vmatmul.mubr.f32.gmra.mrb[10].mxu1 %v2481_v29  ;;  %v948_v29 = vld [vmem:[#allocation13 + $0x48] sm:$0xff] }
 0x201   :  { %904 = vmatprep.mubr.f32.mxu1 %v2501_v38  ;;  %1778 = vmatpush3.bf16.msra.mxu1 %v1777_v33  ;;  %v966_v38 = vld [vmem:[#allocation13 + $0xd8] sm:$0xff]  ;;  %v1789_v46 = vpack.c.bf16 %v948_v29, %v947_v42 }
 0x202   :  { %1780 = vmatprep.subr.bf16.mxu1 %v1779_v47 }
 0x204   :  { %905 = vmatmul.mubr.f32.gmra.mrb[12].mxu1 %v2493_v22  ;;  %v1791_v22 = vpack.c.bf16 %v966_v38, %v965_v44 }
 0x205   :  { %909 = vmatprep.mubr.f32.mxu1 %v2521_v6  ;;  %1782 = vmatpush3.bf16.msra.mxu1 %v1781_v36  ;;  %v950_v6 = vld [vmem:[#allocation13 + $0x58] sm:$0xff] }
 0x206   :  { %1784 = vmatprep.subr.bf16.mxu1 %v1783_v0  ;;  %v1793_v52 = vpack.c.bf16 %v950_v6, %v949_v48 }
 0x208   :  { %910 = vmatmul.mubr.f32.gmra.mrb[14].mxu1 %v2513_v57  ;;  %v970_v57 = vld [vmem:[#allocation13 + $0xf8] sm:$0xff] }
 0x209   :  { %1786 = vmatpush3.bf16.msra.mxu1 %v1785_v45  ;;  %1352 = vmatprep.mubr.msk.f32.mxu1 %vm2429_vm6, %v2507_v41  ;;  %v1799_v1 = vpack.c.bf16 %v970_v57, %v969_v61  ;;  %v953_v41 = vld [vmem:[#allocation13 + $0x70] sm:$0xff] }
 0x20a   :  { %1788 = vmatprep.subr.bf16.mxu1 %v1787_v40  ;;  %v1801_v9 = vpack.c.bf16 %v954_v7, %v953_v41 }
 0x20d   :  { %1790 = vmatpush3.bf16.msra.mxu1 %v1789_v46 }
 0x20e   :  { %1792 = vmatprep.subr.bf16.mxu1 %v1791_v22 }
 0x211   :  { %1794 = vmatpush3.bf16.msra.mxu1 %v1793_v52 }
 0x212   :  { %1796 = vmatprep.subr.bf16.mxu1 %v1795_v53 }
 0x215   :  { %1798 = vmatpush3.bf16.msra.mxu1 %v1797_v63 }
 0x216   :  { %1800 = vmatprep.subr.bf16.mxu1 %v1799_v1 }
 0x219   :  { %1802 = vmatpush3.bf16.msra.mxu1 %v1801_v9  ;;  %v1905_v9 = vld [vmem:[#allocation2] sm:$0xff] }
 0x21c   :  { %1353 = vmatmul.mubr.msk.f32.vlgmr.msra.gmra.mrb[16].mxu1 %vm2429_vm6, %v2499_v37  ;;  %v1076_v37 = vld [vmem:[#allocation14 + $0x8] sm:$0xff] }
 0x21d   :  { %1354 = vmatprep.mubr.msk.f32.mxu1 %vm2441_vm7, %v2527_v8  ;;  %v1803_v50 = vpack.c.bf16 %v1076_v37, %v1075_v30  ;;  %v1078_v8 = vld [vmem:[#allocation14 + $0x18] sm:$0xff] }
 0x21f   :  { %1804 = vmatprep.subr.bf16.mxu0 %v1803_v50  ;;  %1836 = vmatprep.subr.bf16.mxu1 %v1803_v50 }
 0x220   :  { %1355 = vmatmul.mubr.msk.f32.gmra.mrb[18].mxu1 %vm2441_vm7, %v2519_v2  ;;  %1806 = vmatpush3.bf16.msra.mxu0 %v1803_v50  ;;  %v1077_v2 = vld [vmem:[#allocation14 + $0x10] sm:$0xff] }
 0x221   :  { %1356 = vmatprep.mubr.msk.f32.mxu1 %vm2453_vm8, %v2551_v28  ;;  %1838 = vmatpush3.bf16.msra.mxu1 %v1803_v50  ;;  %v1807_v28 = vpack.c.bf16 %v1078_v8, %v1077_v2 }
 0x223   :  { %1808 = vmatprep.subr.bf16.mxu0 %v1807_v28  ;;  %1840 = vmatprep.subr.bf16.mxu1 %v1807_v28 }
 0x224   :  { %1357 = vmatmul.mubr.msk.f32.gmra.mrb[20].mxu1 %vm2453_vm8, %v2539_v17  ;;  %v1080_v17 = vld [vmem:[#allocation14 + $0x28] sm:$0xff]  ;;  %1810 = vmatpush3.bf16.msra.mxu0 %v1807_v28 }
 0x225   :  { %1358 = vmatprep.mubr.msk.f32.mxu1 %vm2464_vm9, %v2555_v31  ;;  %v1811_v59 = vpack.c.bf16 %v1080_v17, %v1079_v13  ;;  %1842 = vmatpush3.bf16.msra.mxu1 %v1807_v28  ;;  %v1084_v31 = vld [vmem:[#allocation14 + $0x48] sm:$0xff] }
 0x226   :  { %v1906_v28 = vld [vmem:[#allocation2 + $0x8] sm:$0xff] }
 0x227   :  { %1812 = vmatprep.subr.bf16.mxu0 %v1811_v59  ;;  %1844 = vmatprep.subr.bf16.mxu1 %v1811_v59 }
 0x228   :  { %1359 = vmatmul.mubr.msk.f32.gmra.mrb[22].mxu1 %vm2464_vm9, %v2543_v18  ;;  %v1083_v18 = vld [vmem:[#allocation14 + $0x40] sm:$0xff]  ;;  %1814 = vmatpush3.bf16.msra.mxu0 %v1811_v59 }
 0x229   :  { %1846 = vmatpush3.bf16.msra.mxu1 %v1811_v59  ;;  %1816 = vmatprep.subr.bf16.mxu0 %v1815_v51  ;;  %v1819_v11 = vpack.c.bf16 %v1084_v31, %v1083_v18 }
 0x22a   :  { %1848 = vmatprep.subr.bf16.mxu1 %v1815_v51 }
 0x22c   :  { %1818 = vmatpush3.bf16.msra.mxu0 %v1815_v51 }
 0x22d   :  { %1850 = vmatpush3.bf16.msra.mxu1 %v1815_v51  ;;  %1820 = vmatprep.subr.bf16.mxu0 %v1819_v11 }
 0x22e   :  { %1852 = vmatprep.subr.bf16.mxu1 %v1819_v11 }
 0x230   :  { %1822 = vmatpush3.bf16.msra.mxu0 %v1819_v11 }
 0x231   :  { %1854 = vmatpush3.bf16.msra.mxu1 %v1819_v11  ;;  %1824 = vmatprep.subr.bf16.mxu0 %v1823_v14  ;;  %v1907_v11 = vld [vmem:[#allocation2 + $0x10] sm:$0xff] }
 0x232   :  { %1856 = vmatprep.subr.bf16.mxu1 %v1823_v14 }
 0x234   :  { %1826 = vmatpush3.bf16.msra.mxu0 %v1823_v14 }
 0x235   :  { %1858 = vmatpush3.bf16.msra.mxu1 %v1823_v14  ;;  %1828 = vmatprep.subr.bf16.mxu0 %v1827_v19 }
 0x236   :  { %1860 = vmatprep.subr.bf16.mxu1 %v1827_v19 }
 0x238   :  { %1830 = vmatpush3.bf16.msra.mxu0 %v1827_v19 }
 0x239   :  { %1862 = vmatpush3.bf16.msra.mxu1 %v1827_v19  ;;  %1832 = vmatprep.subr.bf16.mxu0 %v1831_v27 }
 0x23a   :  { %1864 = vmatprep.subr.bf16.mxu1 %v1831_v27 }
 0x23c   :  { %1834 = vmatpush3.bf16.msra.mxu0 %v1831_v27 }
 0x23d   :  { %1866 = vmatpush3.bf16.msra.mxu1 %v1831_v27 }
 0x2af   :  { %v1395_v32 = vpop.f32.mrb[0].mxu1 }
 0x2b0   :  { %v1396_v62 = vpop.f32.mrb[1].mxu1 }
 0x2b1   :  { %v1397_v3 = vadd.f32 %v1396_v62, %v1395_v32 }
 0x2b3   :  { %v1398_v4 = vpop.f32.mrb[2].mxu1 }
 0x2b4   :  { %v1399_v21 = vpop.f32.mrb[3].mxu1 }
 0x2b5   :  { %v1400_v33 = vadd.f32 %v1399_v21, %v1398_v4 }
 0x2b7   :  { %v1401_v47 = vpop.f32.mrb[4].mxu1 }
 0x2b8   :  { %v1402_v54 = vpop.f32.mrb[5].mxu1 }
 0x2b9   :  { %v1403_v5 = vadd.f32 %v1402_v54, %v1401_v47 }
 0x2bb   :  { %v1404_v34 = vpop.f32.mrb[6].mxu1 }
 0x2bc   :  { %v1405_v35 = vpop.f32.mrb[7].mxu1 }
 0x2bd   :  { %v1406_v36 = vadd.f32 %v1405_v35, %v1404_v34 }
 0x2cf   :  { %v1439_v0 = vpop.f32.mrb[8].mxu1 }
 0x2d0   :  { %v1440_v39 = vpop.f32.mrb[9].mxu1 }
 0x2d1   :  { %v1441_v23 = vadd.f32 %v1440_v39, %v1439_v0 }
 0x2d3   :  { %v897_v20 = vadd.f32 %v1441_v23, %v1397_v3  ;;  %v1442_v56 = vpop.f32.mrb[10].mxu1 }
 0x2d4   :  { %v1443_v45 = vpop.f32.mrb[11].mxu1 }
 0x2d5   :  { %v1444_v40 = vadd.f32 %v1443_v45, %v1442_v56 }
 0x2d7   :  { %v902_v42 = vadd.f32 %v1444_v40, %v1400_v33  ;;  %v1445_v29 = vpop.f32.mrb[12].mxu1 }
 0x2d8   :  { %v1446_v44 = vpop.f32.mrb[13].mxu1 }
 0x2d9   :  { %v1447_v38 = vadd.f32 %v1446_v44, %v1445_v29  ;;  %v1361_v29 = vld [vmem:[%s2639_s10] ss:$0 sm:$0xff]  ;;  %s2132_s10 = smov [#allocation16]  }
 0x2da   :  { %s1320_s16 = sshll.u32 %s2132_s10, 4  ;;  %s1321_s16 = int_to_ptr.vmem [resolvable:$true] %s1320_s16 }
 0x2db   :  { %v907_v46 = vadd.f32 %v1447_v38, %v1403_v5  ;;  %v1448_v22 = vpop.f32.mrb[14].mxu1  ;;  %p2090_p9 = scmp.lt.s32.totalorder %s1321_s16, %s1321_s16 }
 0x2dc   :  { %v1449_v48 = vpop.f32.mrb[15].mxu1 }
 0x2dd   :  { %v1450_v6 = vadd.f32 %v1449_v48, %v1448_v22  ;;  %v1362_v22 = vld [vmem:[%s2640_s11] ss:$0 sm:$0xff]  ;;  %s2085_s11 = scalar_lea.vmem %s1321_s16, 512 }
 0x2de   :  { %p2086_p8 = scmp.ne.s32.totalorder %s1321_s16, %s2085_s11  ;;  %p2091_p10 = scmp.lt.s32.totalorder %s2085_s11, %s2085_s11 }
 0x2df   :  { %v912_v43 = vadd.f32 %v1450_v6, %v1406_v36 }
 0x2e0   :  { %p2092_p11 = por %p2091_p10, %p2090_p9 }
 0x2e2   :  { %p2093_p12 = pnand %p2092_p11, %p2086_p8 }
 0x2ef   :  { %v1483_v49 = vpop.f32.mrb[16].mxu1 }
 0x2f0   :  { %v1484_v52 = vpop.f32.mrb[17].mxu1 }
 0x2f1   :  { %v1485_v53 = vadd.f32 %v1484_v52, %v1483_v49 }
 0x2f3   :  { %v1056_v60 = vadd.f32 %v1485_v53, %v897_v20  ;;  %v1486_v61 = vpop.f32.mrb[18].mxu1 }
 0x2f4   :  { %v1487_v57 = vpop.f32.mrb[19].mxu1 }
 0x2f5   :  { %v1067_v63 = vadd.f32 %v1360_v55, %v1056_v60  ;;  %v1488_v1 = vadd.f32 %v1487_v57, %v1486_v61 }
 0x2f7   :  { %v1057_v41 = vadd.f32 %v1488_v1, %v902_v42  ;;  %v1489_v7 = vpop.f32.mrb[20].mxu1  ;;  %v1071_v30 = vadd.f32 %v1905_v9, %v1067_v63 }
 0x2f8   :  { %v1490_v37 = vpop.f32.mrb[21].mxu1 }
 0x2f9   :  { %v1068_v50 = vadd.f32 %v1360_v55, %v1057_v41  ;;  %v1491_v2 = vadd.f32 %v1490_v37, %v1489_v7  ;;  %1567 = vmatprep.mubr.f32.mxu0 %v1071_v30  ;;  %v1176_v8 = vmul.f32 %v1071_v30, %v1071_v30 }
 0x2fb   :  { %v1072_v13 = vadd.f32 %v1906_v28, %v1068_v50  ;;  %v1058_v17 = vadd.f32 %v1491_v2, %v907_v46  ;;  %v1492_v59 = vpop.f32.mrb[22].mxu1  ;;  %1605 = vmatprep.mubr.f32.mxu1 %v1176_v8 }
 0x2fc   :  { %v1493_v10 = vpop.f32.mrb[23].mxu1 }
 0x2fd   :  { %v1177_v25 = vmul.f32 %v1072_v13, %v1072_v13  ;;  %v1069_v51 = vadd.f32 %v1360_v55, %v1058_v17  ;;  %v1494_v18 = vadd.f32 %v1493_v10, %v1492_v59  ;;  %1568 = vmatmul.mubr.f32.vlgmr.msra.gmra.mrb[8].mxu0 %v1072_v13 }
 0x2ff   :  { %v1059_v31 = vadd.f32 %v1494_v18, %v912_v43  ;;  %1606 = vmatmul.mubr.f32.vlgmr.msra.gmra.mrb[24].mxu1 %v1177_v25  ;;  %v1073_v58 = vadd.f32 %v1907_v11, %v1069_v51 }
 0x301   :  { %v1070_v12 = vadd.f32 %v1360_v55, %v1059_v31  ;;  %1570 = vmatprep.mubr.f32.mxu0 %v1073_v58  ;;  %v1178_v14 = vmul.f32 %v1073_v58, %v1073_v58 }
 0x303   :  { %1608 = vmatprep.mubr.f32.mxu1 %v1178_v14  ;;  %v1074_v16 = vadd.f32 %v1908_v15, %v1070_v12 }
 0x305   :  { %1571 = vmatmul.mubr.f32.gmra.mrb[10].mxu0 %v1074_v16  ;;  %v1179_v19 = vmul.f32 %v1074_v16, %v1074_v16 }
 0x307   :  { %1609 = vmatmul.mubr.f32.gmra.mrb[26].mxu1 %v1179_v19 }
 0x3d0   :  { %v1569_v24 = vpop.f32.mrb[8].mxu0 }
 0x3d1   :  { %v1266_v26 = vmul.f32 %v1569_v24, %v1569_v24  ;;  %v1157_v27 = vpop.f32.mrb[9].mxu0  ;;  %v1274_v45 = vsub.f32 %v1072_v13, %v1569_v24 }
 0x3d2   :  { %v1265_v32 = vmul.f32 %v1157_v27, %v1157_v27  ;;  %v1607_v62 = vpop.f32.mrb[24].mxu1  ;;  %v1273_v42 = vsub.f32 %v1071_v30, %v1157_v27 }
 0x3d3   :  { %v1270_v3 = vsub.f32 %v1607_v62, %v1266_v26  ;;  %v1246_v4 = vpop.f32.mrb[25].mxu1 }
 0x3d4   :  { %v1269_v21 = vsub.f32 %v1246_v4, %v1265_v32 }
 0x3d5   :  { %v1278_v33 = vadd.f32 1e-05, %v1270_v3 }
 0x3d6   :  { %v1277_v47 = vadd.f32 1e-05, %v1269_v21 }
 0x3d7   :  { %1897 = vrsqrt.f32 %v1278_v33 }
 0x3d8   :  { %1899 = vrsqrt.f32 %v1277_v47  ;;  %v1572_v54 = vpop.f32.mrb[10].mxu0 }
 0x3d9   :  { %v1268_v5 = vmul.f32 %v1572_v54, %v1572_v54  ;;  %v1167_v34 = vpop.f32.mrb[11].mxu0  ;;  %v1276_v52 = vsub.f32 %v1074_v16, %v1572_v54 }
 0x3da   :  { %v1267_v35 = vmul.f32 %v1167_v34, %v1167_v34  ;;  %v1610_v36 = vpop.f32.mrb[26].mxu1  ;;  %v1275_v55 = vsub.f32 %v1073_v58, %v1167_v34 }
 0x3db   :  { %v1272_v0 = vsub.f32 %v1610_v36, %v1268_v5  ;;  %v1256_v39 = vpop.f32.mrb[27].mxu1 }
 0x3dc   :  { %v1271_v23 = vsub.f32 %v1256_v39, %v1267_v35 }
 0x3dd   :  { %v1280_v20 = vadd.f32 1e-05, %v1272_v0 }
 0x3de   :  { %v1279_v56 = vadd.f32 1e-05, %v1271_v23 }
 0x3df   :  { %1901 = vrsqrt.f32 %v1280_v20 }
 0x3e0   :  { %1903 = vrsqrt.f32 %v1279_v56 }
 0x3e1   :  { %v1898_v40 = vpop.eup %1897 }
 0x3e2   :  { %v1900_v44 = vpop.eup %1899  ;;  %v1286_v38 = vmul.f32 %v1898_v40, %v1274_v45 }
 0x3e3   :  { %v1285_v46 = vmul.f32 %v1900_v44, %v1273_v42 }
 0x3e4   :  { %v1297_v48 = vmul.f32 %v1361_v29, %v1286_v38 }
 0x3e5   :  { %v1296_v6 = vmul.f32 %v1361_v29, %v1285_v46 }
 0x3e6   :  { %v1308_v43 = vadd.f32 %v1362_v22, %v1297_v48 }
 0x3e7   :  { %v1307_v49 = vadd.f32 %v1362_v22, %v1296_v6 }
 0x3e8   :  { %1312 = vst [vmem:[#allocation16 + $0x8] sm:$0xff] %v1308_v43 }
 0x3e9   :  { %v1902_v53 = vpop.eup %1901  ;;  %1311 = vst [vmem:[#allocation16] sm:$0xff] %v1307_v49 }
 0x3ea   :  { %v1904_v60 = vpop.eup %1903  ;;  %v1288_v61 = vmul.f32 %v1902_v53, %v1276_v52 }
 0x3eb   :  { %v1287_v57 = vmul.f32 %v1904_v60, %v1275_v55 }
 0x3ec   :  { %v1299_v63 = vmul.f32 %v1361_v29, %v1288_v61 }
 0x3ed   :  { %v1298_v1 = vmul.f32 %v1361_v29, %v1287_v57 }
 0x3ee   :  { %v1310_v41 = vadd.f32 %v1362_v22, %v1299_v63 }
 0x3ef   :  { %v1309_v7 = vadd.f32 %v1362_v22, %v1298_v1 }
 0x3f0   :  { %1314 = vst [vmem:[#allocation16 + $0x18] sm:$0xff] %v1310_v41 }
 0x3f1   :  { %1313 = vst [vmem:[#allocation16 + $0x10] sm:$0xff] %v1309_v7 }
 0x3f2   :  { %2096 = shalt.err (!%p2093_p12)
}
 0x3f3   :  { %s2097_s17 = scalar_lea.hbm %s2641_s12, 512 }
 0x3f4   :  { %p2098_p13 = scmp.ne.s32.totalorder %s2641_s12, %s2097_s17  ;;  %p2101_p0 = scmp.lt.u32.totalorder %s2097_s17, %s2641_s12 }
 0x3f6   :  { %p2103_p1 = pnand %p2101_p0, %p2098_p13 }
 0x3f8   :  { %2106 = shalt.err (!%p2103_p1)
}
 0x3f9   :  { %1326 = dma.vmem_to_hbm [thread:$0]  %s1321_s16, 512, %s2641_s12, [#allocation4], %s2125_s18, %s2125_s18, %s2126_s25  }
 0x3fa   :  { %2117 = dma.done.wait [#allocation4], 512  }
 0x3fb   :  { %2118 = vsyncadd [#allocation4], 4294966784 }
 0x3fc   :  { %1330 = vsyncpa [#allocation3], 1 }
 0x3fd   :  { %1331 = vsyncpa [#allocation6], 1 }
 0x3fe   :  { %1332 = vsyncpa [#allocation9], 1 }
 0x3ff   :  { %1333 = vsyncpa [#allocation12], 1 }
 0x400   :  { %1334 = vsyncpa [#allocation15], 1 }
 0x401   :  { %1335 = vsyncpa [#allocation4], 1 }

</bundles_post_ra>
